<compile_context>
chip_gen: v7x
topology: tpu7x:2x2x1
jax: 0.10.0
libtpu: 0.0.40
codegen_flags: <defaults>
</compile_context>

<pallas_src>
import functools

import jax
import jax.numpy as jnp
from jax.experimental import pallas as pl
from jax.experimental.pallas import tpu as pltpu


def _round_up(x, m):
    return ((x + m - 1) // m) * m


# ---------------------------------------------------------------------------
# Fused kernel
# ---------------------------------------------------------------------------
def _fagcn_kernel(x_ref, w1_ref, b1_ref, grc_ref, gct_ref, nd_ref, wg_ref,
                  bg_ref, w2_ref, b2_ref, o_ref, a_ref, *,
                  eps, k_layers, h_real, e_pad):
    f32 = jnp.float32
    bf16 = jnp.bfloat16

    # input projection: h = relu(x @ W1^T + b1)                 [NP, HP] (f32)
    h = jnp.maximum(
        jnp.dot(x_ref[...], w1_ref[...], preferred_element_type=f32)
        + b1_ref[...], 0.0)
    raw = h

    grc = grc_ref[...]            # [2*EP, NP] bf16 one-hot (row half | col half)
    gct = gct_ref[...]            # [NP, EP]   bf16 one-hot(col)^T
    nd = nd_ref[...]              # [NP, 1]    f32 deg^-0.5
    nd_bf = nd.astype(bf16)
    wg_all = wg_ref[...]          # [HP, 2K]   f32 per-layer gate weights (wr | wc)

    for i in range(k_layers):
        # node-side gate pre-activations; bias folded in after the gather
        s = jnp.dot(h, wg_all[:, 2 * i:2 * i + 2],
                    preferred_element_type=f32)               # [NP, 2]

        # augmented node matrix in bf16 scratch:
        #   lanes [0, h_real)       -> h
        #   lane  h_real            -> nd
        #   lanes h_real+1..+2      -> h@wr, h@wc
        #   lanes >= h_real+3       -> 0   (h is exactly 0 there by induction)
        a_ref[...] = h.astype(bf16)
        a_ref[:, h_real:h_real + 1] = nd_bf
        a_ref[:, h_real + 1:h_real + 3] = s.astype(bf16)

        # single stacked gather (row half then col half), bf16 MXU, f32 accum
        gath = jnp.dot(grc, a_ref[...], preferred_element_type=f32)  # [2EP, HP]
        r = gath[:e_pad]
        c = gath[e_pad:]
        # TODO(synk): if HID grows so HP > 128, gather only a 128-lane gate
        #             slab for the col half (only the s_c lane is consumed).

        gate = jnp.tanh(r[:, h_real + 1:h_real + 2]
                        + c[:, h_real + 2:h_real + 3] + bg_ref[i])   # [EP, 1]
        coef = gate * r[:, h_real:h_real + 1]                        # gate * nd[row]
        msg = (coef * r).astype(bf16)                                # per-edge messages

        # scatter-add (exact one-hot in bf16); nd[col] applied in f32 after
        agg = nd * jnp.dot(gct, msg, preferred_element_type=f32)     # [NP, HP]
        h = eps * raw + agg
        # TODO(synk): dropout on `norm` / input features omitted (eval mode, p == 0).

    # final linear + log_softmax (padded class lanes carry -1e30 bias)
    logits = jnp.dot(h, w2_ref[...], preferred_element_type=f32) + b2_ref[...]
    m = jnp.max(logits, axis=1, keepdims=True)
    z = logits - m
    lse = jnp.log(jnp.sum(jnp.exp(z), axis=1, keepdims=True))
    o_ref[...] = z - lse


# ---------------------------------------------------------------------------
# Host wrapper
# ---------------------------------------------------------------------------
def _fs(shape):
    return pl.BlockSpec(shape, lambda i: (0,) * len(shape))


def _pad2(a, rows, cols, value=0.0):
    return jnp.pad(a, ((0, rows - a.shape[0]), (0, cols - a.shape[1])),
                   constant_values=value)


def fagcn_forward(x, row, col, params, eps, k_layers):
    n, f = x.shape
    hd = params["w1"].shape[0]
    c = params["w2"].shape[0]
    e = row.shape[0]

    np_ = _round_up(n, 128)          # node dim (lane dim of g_rc)
    fp = _round_up(f, 128)
    hp = _round_up(hd + 3, 128)      # room for the 3 extra gate/norm lanes
    cp = _round_up(c, 128)
    ep = _round_up(e, 128)           # edge dim (lane dim of g_ct, sublane of gath)

    # ---- graph preprocessing (index structure only) -----------------------
    deg = jnp.zeros((n,), jnp.float32).at[row].add(1.0)
    nd = jnp.power(jnp.maximum(deg, 1.0), -0.5)
    onehot = jnp.arange(n)[None, :]
    g_row_raw = (row[:, None] == onehot).astype(jnp.bfloat16)   # [E, N]
    g_col_raw = (col[:, None] == onehot).astype(jnp.bfloat16)   # [E, N]
    g_rc = jnp.concatenate([_pad2(g_row_raw, ep, np_),
                            _pad2(g_col_raw, ep, np_)], axis=0)  # [2EP, NP] bf16
    g_ct = _pad2(g_col_raw.T, np_, ep)                           # [NP, EP]  bf16
    nd2 = _pad2(nd.reshape(n, 1), np_, 1)

    # ---- lane-padded parameters (kept f32) ---------------------------------
    x_p = _pad2(x, np_, fp)
    w1_t = _pad2(params["w1"].T, fp, hp)
    b1_p = _pad2(params["b1"].reshape(1, -1), 1, hp)
    w2_t = _pad2(params["w2"].T, hp, cp)
    b2_p = _pad2(params["b2"].reshape(1, -1), 1, cp, value=-1e30)

    gate_cols = []
    for i in range(k_layers):
        wg = params["gate_w"][i]                       # [1, 2*hd]
        wr = wg[0, :hd].reshape(hd, 1)
        wc = wg[0, hd:].reshape(hd, 1)
        gate_cols.append(jnp.concatenate([wr, wc], axis=1))      # [hd, 2]
    wg_all = _pad2(jnp.concatenate(gate_cols, axis=1), hp, 2 * k_layers)
    bgs = jnp.stack([params["gate_b"][i].reshape(()) for i in range(k_layers)]
                    ).astype(jnp.float32)              # [K] -> SMEM scalars

    # ---- VMEM budget & cost estimate ---------------------------------------
    vmem_bytes = (x_p.size * 4 + w1_t.size * 4 + b1_p.size * 4
                  + g_rc.size * 2 + g_ct.size * 2 + nd2.size * 4
                  + max(wg_all.size, hp * 128) * 4
                  + w2_t.size * 4 + b2_p.size * 4
                  + np_ * cp * 4              # output
                  + np_ * hp * 2)             # bf16 scratch
    vmem_limit = int(min(max(2 * vmem_bytes + (4 << 20), 16 << 20), 112 << 20))

    flops = int(2 * np_ * fp * hp
                + k_layers * (2 * np_ * hp * 2
                              + 2 * (2 * ep) * np_ * hp
                              + 2 * np_ * ep * hp)
                + 2 * np_ * hp * cp)
    transcendentals = int(k_layers * ep + np_ * cp)

    kernel = functools.partial(_fagcn_kernel, eps=float(eps),
                               k_layers=int(k_layers), h_real=int(hd),
                               e_pad=int(ep))

    out = pl.pallas_call(
        kernel,
        out_shape=jax.ShapeDtypeStruct((np_, cp), jnp.float32),
        grid=(1,),
        in_specs=[
            _fs((np_, fp)),                 # x
            _fs((fp, hp)),                  # W1^T
            _fs((1, hp)),                   # b1
            _fs((2 * ep, np_)),             # stacked one-hot gather (bf16)
            _fs((np_, ep)),                 # one-hot(col)^T scatter (bf16)
            _fs((np_, 1)),                  # nd = deg^-0.5
            _fs((hp, 2 * k_layers)),        # gate weights
            pl.BlockSpec(memory_space=pltpu.MemorySpace.SMEM),  # gate biases
            _fs((hp, cp)),                  # W2^T
            _fs((1, cp)),                   # b2 (padded lanes = -1e30)
        ],
        out_specs=_fs((np_, cp)),
        scratch_shapes=[pltpu.VMEM((np_, hp), jnp.bfloat16)],   # augmented nodes
        compiler_params=pltpu.CompilerParams(
            dimension_semantics=("arbitrary",),
            vmem_limit_bytes=vmem_limit),
        cost_estimate=pl.CostEstimate(
            flops=flops, transcendentals=transcendentals,
            bytes_accessed=int(vmem_bytes)),
    )(x_p, w1_t, b1_p, g_rc, g_ct, nd2, wg_all, bgs, w2_t, b2_p)

    return out[:n, :c]


# ---------------------------------------------------------------------------
# pure-JAX f32 reference mirroring the PyTorch / PyG semantics
# ---------------------------------------------------------------------------
def fagcn_reference(x, row, col, params, eps, k_layers):
    n = x.shape[0]
    h = jax.nn.relu(x @ params["w1"].T + params["b1"])
    deg = jnp.zeros((n,), jnp.float32).at[row].add(1.0)
    nd = jnp.power(jnp.maximum(deg, 1.0), -0.5)
    raw = h
    for i in range(k_layers):
        wg, bg = params["gate_w"][i], params["gate_b"][i]
        h2 = jnp.concatenate([h[row], h[col]], axis=1)
        g = jnp.tanh(h2 @ wg.T + bg)[:, 0]
        norm = g * nd[row] * nd[col]
        msg = norm[:, None] * h[row]
        agg = jnp.zeros_like(h).at[col].add(msg)
        h = eps * raw + agg
    logits = h @ params["w2"].T + params["b2"]
    return jax.nn.log_softmax(logits, axis=1)


# ---------------------------------------------------------------------------
# deterministic parameter init (matches shapes / init style of the module)
# ---------------------------------------------------------------------------
def xavier_normal(key, shape, gain):
    fan_out, fan_in = shape            # PyTorch Linear weight is [out, in]
    std = gain * (2.0 / (fan_in + fan_out)) ** 0.5
    return std * jax.random.normal(key, shape, dtype=jnp.float32)


def linear_bias(key, fan_in, fan_out):
    bound = 1.0 / (fan_in ** 0.5)
    return jax.random.uniform(key, (fan_out,), jnp.float32, -bound, bound)


if __name__ == "__main__":
    N, FEAT, HID, CLS, E, K = 32, 16, 32, 7, 64, 2
    EPS = 0.3

    key = jax.random.PRNGKey(0)
    keys = jax.random.split(key, 8 + 2 * K)

    x = jax.random.normal(keys[0], (N, FEAT), dtype=jnp.float32)
    row = jax.random.randint(keys[1], (E,), 0, N)
    col = jax.random.randint(keys[2], (E,), 0, N)

    params = {
        "w1": xavier_normal(keys[3], (HID, FEAT), 1.414),
        "b1": linear_bias(keys[4], FEAT, HID),
        "w2": xavier_normal(keys[5], (CLS, HID), 1.414),
        "b2": linear_bias(keys[6], HID, CLS),
        "gate_w": [xavier_normal(keys[7 + 2 * i], (1, 2 * HID), 1.414)
                   for i in range(K)],
        "gate_b": [linear_bias(keys[8 + 2 * i], 2 * HID, 1) for i in range(K)],
    }

    out = fagcn_forward(x, row, col, params, EPS, K)
    out = jax.block_until_ready(out)

    ref = fagcn_reference(x, row, col, params, EPS, K)
    err = jnp.abs(out - ref)
    max_err = float(jnp.max(err))
    mean_err = float(jnp.mean(err))
    assert jnp.all(jnp.isfinite(out)), "non-finite output"
    # edge matmuls use bf16 operands (f32 accumulation); tolerance sized for that
    assert max_err < 7.5e-2, f"max mismatch vs f32 reference: {max_err}"
    assert mean_err < 1e-2, f"mean mismatch vs f32 reference: {mean_err}"

    print("KERNEL_OK")
</pallas_src>

<mosaic_0001>
module attributes {stable_mosaic.version = 11 : i64} {
  func.func @_fagcn_kernel(%arg0: i32, %arg1: memref<128x128xf32, #tpu.memory_space<vmem>>, %arg2: memref<128x128xf32, #tpu.memory_space<vmem>>, %arg3: memref<1x128xf32, #tpu.memory_space<vmem>>, %arg4: memref<256x128xbf16, #tpu.memory_space<vmem>>, %arg5: memref<128x128xbf16, #tpu.memory_space<vmem>>, %arg6: memref<128x1xf32, #tpu.memory_space<vmem>>, %arg7: memref<128x4xf32, #tpu.memory_space<vmem>>, %arg8: memref<2xf32, #tpu.memory_space<smem>>, %arg9: memref<128x128xf32, #tpu.memory_space<vmem>>, %arg10: memref<1x128xf32, #tpu.memory_space<vmem>>, %arg11: memref<128x128xf32, #tpu.memory_space<vmem>>, %arg12: memref<128x128xbf16, #tpu.memory_space<vmem>>) attributes {dimension_semantics = [#tpu.dimension_semantics<arbitrary>], iteration_bounds = array<i64: 1>, scalar_prefetch = 0 : i64, scratch_operands = 1 : i64, tpu.core_type = #tpu.core_type<tc>, window_params = [{pipeline_mode = #tpu.pipeline_mode<synchronous>, transform_indices = @transform_0, window_bounds = array<i64: 128, 128>}, {pipeline_mode = #tpu.pipeline_mode<synchronous>, transform_indices = @transform_1, window_bounds = array<i64: 128, 128>}, {pipeline_mode = #tpu.pipeline_mode<synchronous>, transform_indices = @transform_2, window_bounds = array<i64: 1, 128>}, {pipeline_mode = #tpu.pipeline_mode<synchronous>, transform_indices = @transform_3, window_bounds = array<i64: 256, 128>}, {pipeline_mode = #tpu.pipeline_mode<synchronous>, transform_indices = @transform_4, window_bounds = array<i64: 128, 128>}, {pipeline_mode = #tpu.pipeline_mode<synchronous>, transform_indices = @transform_5, window_bounds = array<i64: 128, 1>}, {pipeline_mode = #tpu.pipeline_mode<synchronous>, transform_indices = @transform_6, window_bounds = array<i64: 128, 4>}, {transform_indices = @transform_7, window_bounds = array<i64: 2>}, {pipeline_mode = #tpu.pipeline_mode<synchronous>, transform_indices = @transform_8, window_bounds = array<i64: 128, 128>}, {pipeline_mode = #tpu.pipeline_mode<synchronous>, transform_indices = @transform_9, window_bounds = array<i64: 1, 128>}, {pipeline_mode = #tpu.pipeline_mode<synchronous>, transform_indices = @transform_10, window_bounds = array<i64: 128, 128>}]} {
    %c0 = arith.constant 0 : index
    %c0_0 = arith.constant 0 : index
    %0 = vector.load %arg1[%c0, %c0_0] : memref<128x128xf32, #tpu.memory_space<vmem>>, vector<128x128xf32>
    %c0_1 = arith.constant 0 : index
    %c0_2 = arith.constant 0 : index
    %1 = vector.load %arg2[%c0_1, %c0_2] : memref<128x128xf32, #tpu.memory_space<vmem>>, vector<128x128xf32>
    %cst = arith.constant dense<0.000000e+00> : vector<128x128xf32>
    %2 = tpu.matmul %0, %1, %cst {dimension_numbers = #tpu.dot_dimension_numbers<[1], [0], [0], [1], [0, 0, 1, 1], [], []>} : vector<128x128xf32>, vector<128x128xf32>, vector<128x128xf32> -> vector<128x128xf32>
    %c0_3 = arith.constant 0 : index
    %c0_4 = arith.constant 0 : index
    %3 = vector.load %arg3[%c0_3, %c0_4] : memref<1x128xf32, #tpu.memory_space<vmem>>, vector<1x128xf32>
    %4 = vector.broadcast %3 : vector<1x128xf32> to vector<128x128xf32>
    %5 = arith.addf %2, %4 : vector<128x128xf32>
    %cst_5 = arith.constant 0.000000e+00 : f32
    %6 = vector.broadcast %cst_5 : f32 to vector<128x128xf32>
    %7 = arith.maximumf %5, %6 : vector<128x128xf32>
    %c0_6 = arith.constant 0 : index
    %c0_7 = arith.constant 0 : index
    %8 = vector.load %arg4[%c0_6, %c0_7] : memref<256x128xbf16, #tpu.memory_space<vmem>>, vector<256x128xbf16>
    %c0_8 = arith.constant 0 : index
    %c0_9 = arith.constant 0 : index
    %9 = vector.load %arg5[%c0_8, %c0_9] : memref<128x128xbf16, #tpu.memory_space<vmem>>, vector<128x128xbf16>
    %c0_10 = arith.constant 0 : index
    %c0_11 = arith.constant 0 : index
    %10 = vector.load %arg6[%c0_10, %c0_11] : memref<128x1xf32, #tpu.memory_space<vmem>>, vector<128x1xf32>
    %11 = arith.truncf %10 : vector<128x1xf32> to vector<128x1xbf16>
    %c0_12 = arith.constant 0 : index
    %c0_13 = arith.constant 0 : index
    %12 = vector.load %arg7[%c0_12, %c0_13] : memref<128x4xf32, #tpu.memory_space<vmem>>, vector<128x4xf32>
    %13 = vector.extract_strided_slice %12 {offsets = [0, 0], sizes = [128, 2], strides = [1, 1]} : vector<128x4xf32> to vector<128x2xf32>
    %cst_14 = arith.constant dense<0.000000e+00> : vector<128x2xf32>
    %14 = tpu.matmul %7, %13, %cst_14 {dimension_numbers = #tpu.dot_dimension_numbers<[1], [0], [0], [1], [0, 0, 1, 1], [], []>} : vector<128x128xf32>, vector<128x2xf32>, vector<128x2xf32> -> vector<128x2xf32>
    %15 = arith.truncf %7 : vector<128x128xf32> to vector<128x128xbf16>
    %c0_15 = arith.constant 0 : index
    %c0_16 = arith.constant 0 : index
    %16 = vector.load %arg12[%c0_15, %c0_16] : memref<128x128xbf16, #tpu.memory_space<vmem>>, vector<128x128xbf16>
    tpu.vector_store %arg12[%c0_15, %c0_16], %15 {strides = array<i32>} : memref<128x128xbf16, #tpu.memory_space<vmem>>, vector<128x128xbf16>,
    %c0_17 = arith.constant 0 : index
    %c32 = arith.constant 32 : index
    %17 = vector.load %arg12[%c0_17, %c32] : memref<128x128xbf16, #tpu.memory_space<vmem>>, vector<128x1xbf16>
    tpu.vector_store %arg12[%c0_17, %c32], %11 {strides = array<i32>} : memref<128x128xbf16, #tpu.memory_space<vmem>>, vector<128x1xbf16>,
    %18 = arith.truncf %14 : vector<128x2xf32> to vector<128x2xbf16>
    %c0_18 = arith.constant 0 : index
    %c33 = arith.constant 33 : index
    %19 = vector.load %arg12[%c0_18, %c33] : memref<128x128xbf16, #tpu.memory_space<vmem>>, vector<128x2xbf16>
    tpu.vector_store %arg12[%c0_18, %c33], %18 {strides = array<i32>} : memref<128x128xbf16, #tpu.memory_space<vmem>>, vector<128x2xbf16>,
    %c0_19 = arith.constant 0 : index
    %c0_20 = arith.constant 0 : index
    %20 = vector.load %arg12[%c0_19, %c0_20] : memref<128x128xbf16, #tpu.memory_space<vmem>>, vector<128x128xbf16>
    %cst_21 = arith.constant dense<0.000000e+00> : vector<256x128xf32>
    %21 = tpu.matmul %8, %20, %cst_21 {dimension_numbers = #tpu.dot_dimension_numbers<[1], [0], [0], [1], [0, 0, 1, 1], [], []>} : vector<256x128xbf16>, vector<128x128xbf16>, vector<256x128xf32> -> vector<256x128xf32>
    %22 = vector.extract_strided_slice %21 {offsets = [0, 0], sizes = [128, 128], strides = [1, 1]} : vector<256x128xf32> to vector<128x128xf32>
    %23 = vector.extract_strided_slice %21 {offsets = [128, 0], sizes = [128, 128], strides = [1, 1]} : vector<256x128xf32> to vector<128x128xf32>
    %24 = vector.extract_strided_slice %22 {offsets = [0, 33], sizes = [128, 1], strides = [1, 1]} : vector<128x128xf32> to vector<128x1xf32>
    %25 = vector.extract_strided_slice %23 {offsets = [0, 34], sizes = [128, 1], strides = [1, 1]} : vector<128x128xf32> to vector<128x1xf32>
    %26 = arith.addf %24, %25 : vector<128x1xf32>
    %c0_22 = arith.constant 0 : index
    %27 = memref.load %arg8[%c0_22] : memref<2xf32, #tpu.memory_space<smem>>
    %28 = vector.broadcast %27 : f32 to vector<128x1xf32>
    %29 = arith.addf %26, %28 : vector<128x1xf32>
    %30 = math.tanh %29 : vector<128x1xf32>
    %31 = vector.extract_strided_slice %22 {offsets = [0, 32], sizes = [128, 1], strides = [1, 1]} : vector<128x128xf32> to vector<128x1xf32>
    %32 = arith.mulf %30, %31 : vector<128x1xf32>
    %33 = vector.broadcast %32 : vector<128x1xf32> to vector<128x128xf32>
    %34 = arith.mulf %33, %22 : vector<128x128xf32>
    %35 = arith.truncf %34 : vector<128x128xf32> to vector<128x128xbf16>
    %cst_23 = arith.constant dense<0.000000e+00> : vector<128x128xf32>
    %36 = tpu.matmul %9, %35, %cst_23 {dimension_numbers = #tpu.dot_dimension_numbers<[1], [0], [0], [1], [0, 0, 1, 1], [], []>} : vector<128x128xbf16>, vector<128x128xbf16>, vector<128x128xf32> -> vector<128x128xf32>
    %37 = vector.broadcast %10 : vector<128x1xf32> to vector<128x128xf32>
    %38 = arith.mulf %37, %36 : vector<128x128xf32>
    %cst_24 = arith.constant 3.000000e-01 : f32
    %39 = vector.broadcast %cst_24 : f32 to vector<128x128xf32>
    %40 = arith.mulf %39, %7 : vector<128x128xf32>
    %41 = arith.addf %40, %38 : vector<128x128xf32>
    %42 = vector.extract_strided_slice %12 {offsets = [0, 2], sizes = [128, 2], strides = [1, 1]} : vector<128x4xf32> to vector<128x2xf32>
    %cst_25 = arith.constant dense<0.000000e+00> : vector<128x2xf32>
    %43 = tpu.matmul %41, %42, %cst_25 {dimension_numbers = #tpu.dot_dimension_numbers<[1], [0], [0], [1], [0, 0, 1, 1], [], []>} : vector<128x128xf32>, vector<128x2xf32>, vector<128x2xf32> -> vector<128x2xf32>
    %44 = arith.truncf %41 : vector<128x128xf32> to vector<128x128xbf16>
    %c0_26 = arith.constant 0 : index
    %c0_27 = arith.constant 0 : index
    %45 = vector.load %arg12[%c0_26, %c0_27] : memref<128x128xbf16, #tpu.memory_space<vmem>>, vector<128x128xbf16>
    tpu.vector_store %arg12[%c0_26, %c0_27], %44 {strides = array<i32>} : memref<128x128xbf16, #tpu.memory_space<vmem>>, vector<128x128xbf16>,
    %c0_28 = arith.constant 0 : index
    %c32_29 = arith.constant 32 : index
    %46 = vector.load %arg12[%c0_28, %c32_29] : memref<128x128xbf16, #tpu.memory_space<vmem>>, vector<128x1xbf16>
    tpu.vector_store %arg12[%c0_28, %c32_29], %11 {strides = array<i32>} : memref<128x128xbf16, #tpu.memory_space<vmem>>, vector<128x1xbf16>,
    %47 = arith.truncf %43 : vector<128x2xf32> to vector<128x2xbf16>
    %c0_30 = arith.constant 0 : index
    %c33_31 = arith.constant 33 : index
    %48 = vector.load %arg12[%c0_30, %c33_31] : memref<128x128xbf16, #tpu.memory_space<vmem>>, vector<128x2xbf16>
    tpu.vector_store %arg12[%c0_30, %c33_31], %47 {strides = array<i32>} : memref<128x128xbf16, #tpu.memory_space<vmem>>, vector<128x2xbf16>,
    %c0_32 = arith.constant 0 : index
    %c0_33 = arith.constant 0 : index
    %49 = vector.load %arg12[%c0_32, %c0_33] : memref<128x128xbf16, #tpu.memory_space<vmem>>, vector<128x128xbf16>
    %cst_34 = arith.constant dense<0.000000e+00> : vector<256x128xf32>
    %50 = tpu.matmul %8, %49, %cst_34 {dimension_numbers = #tpu.dot_dimension_numbers<[1], [0], [0], [1], [0, 0, 1, 1], [], []>} : vector<256x128xbf16>, vector<128x128xbf16>, vector<256x128xf32> -> vector<256x128xf32>
    %51 = vector.extract_strided_slice %50 {offsets = [0, 0], sizes = [128, 128], strides = [1, 1]} : vector<256x128xf32> to vector<128x128xf32>
    %52 = vector.extract_strided_slice %50 {offsets = [128, 0], sizes = [128, 128], strides = [1, 1]} : vector<256x128xf32> to vector<128x128xf32>
    %53 = vector.extract_strided_slice %51 {offsets = [0, 33], sizes = [128, 1], strides = [1, 1]} : vector<128x128xf32> to vector<128x1xf32>
    %54 = vector.extract_strided_slice %52 {offsets = [0, 34], sizes = [128, 1], strides = [1, 1]} : vector<128x128xf32> to vector<128x1xf32>
    %55 = arith.addf %53, %54 : vector<128x1xf32>
    %c1 = arith.constant 1 : index
    %56 = memref.load %arg8[%c1] : memref<2xf32, #tpu.memory_space<smem>>
    %57 = vector.broadcast %56 : f32 to vector<128x1xf32>
    %58 = arith.addf %55, %57 : vector<128x1xf32>
    %59 = math.tanh %58 : vector<128x1xf32>
    %60 = vector.extract_strided_slice %51 {offsets = [0, 32], sizes = [128, 1], strides = [1, 1]} : vector<128x128xf32> to vector<128x1xf32>
    %61 = arith.mulf %59, %60 : vector<128x1xf32>
    %62 = vector.broadcast %61 : vector<128x1xf32> to vector<128x128xf32>
    %63 = arith.mulf %62, %51 : vector<128x128xf32>
    %64 = arith.truncf %63 : vector<128x128xf32> to vector<128x128xbf16>
    %cst_35 = arith.constant dense<0.000000e+00> : vector<128x128xf32>
    %65 = tpu.matmul %9, %64, %cst_35 {dimension_numbers = #tpu.dot_dimension_numbers<[1], [0], [0], [1], [0, 0, 1, 1], [], []>} : vector<128x128xbf16>, vector<128x128xbf16>, vector<128x128xf32> -> vector<128x128xf32>
    %66 = vector.broadcast %10 : vector<128x1xf32> to vector<128x128xf32>
    %67 = arith.mulf %66, %65 : vector<128x128xf32>
    %cst_36 = arith.constant 3.000000e-01 : f32
    %68 = vector.broadcast %cst_36 : f32 to vector<128x128xf32>
    %69 = arith.mulf %68, %7 : vector<128x128xf32>
    %70 = arith.addf %69, %67 : vector<128x128xf32>
    %c0_37 = arith.constant 0 : index
    %c0_38 = arith.constant 0 : index
    %71 = vector.load %arg9[%c0_37, %c0_38] : memref<128x128xf32, #tpu.memory_space<vmem>>, vector<128x128xf32>
    %cst_39 = arith.constant dense<0.000000e+00> : vector<128x128xf32>
    %72 = tpu.matmul %70, %71, %cst_39 {dimension_numbers = #tpu.dot_dimension_numbers<[1], [0], [0], [1], [0, 0, 1, 1], [], []>} : vector<128x128xf32>, vector<128x128xf32>, vector<128x128xf32> -> vector<128x128xf32>
    %c0_40 = arith.constant 0 : index
    %c0_41 = arith.constant 0 : index
    %73 = vector.load %arg10[%c0_40, %c0_41] : memref<1x128xf32, #tpu.memory_space<vmem>>, vector<1x128xf32>
    %74 = vector.broadcast %73 : vector<1x128xf32> to vector<128x128xf32>
    %75 = arith.addf %72, %74 : vector<128x128xf32>
    %cst_42 = arith.constant dense<0xFF800000> : vector<128xf32>
    %76 = vector.multi_reduction <maximumf>, %75, %cst_42 [1] : vector<128x128xf32> to vector<128xf32>
    %77 = vector.shape_cast %76 : vector<128xf32> to vector<128x1xf32>
    %78 = vector.broadcast %77 : vector<128x1xf32> to vector<128x128xf32>
    %79 = arith.subf %75, %78 : vector<128x128xf32>
    %80 = math.exp %79 : vector<128x128xf32>
    %cst_43 = arith.constant dense<0.000000e+00> : vector<128xf32>
    %81 = vector.multi_reduction <add>, %80, %cst_43 [1] : vector<128x128xf32> to vector<128xf32>
    %82 = vector.shape_cast %81 : vector<128xf32> to vector<128x1xf32>
    %83 = math.log %82 : vector<128x1xf32>
    %84 = vector.broadcast %83 : vector<128x1xf32> to vector<128x128xf32>
    %85 = arith.subf %79, %84 : vector<128x128xf32>
    %c0_44 = arith.constant 0 : index
    %c0_45 = arith.constant 0 : index
    %86 = vector.load %arg11[%c0_44, %c0_45] : memref<128x128xf32, #tpu.memory_space<vmem>>, vector<128x128xf32>
    tpu.vector_store %arg11[%c0_44, %c0_45], %85 {strides = array<i32>} : memref<128x128xf32, #tpu.memory_space<vmem>>, vector<128x128xf32>,
    return
  }
  func.func @transform_0(%arg0: i32) -> (i32, i32) {
    %c0_i32 = arith.constant 0 : i32
    %c0_i32_0 = arith.constant 0 : i32
    %c0_i32_1 = arith.constant 0 : i32
    return %c0_i32, %c0_i32_0 : i32, i32
  }
  func.func @transform_1(%arg0: i32) -> (i32, i32) {
    %c0_i32 = arith.constant 0 : i32
    %c0_i32_0 = arith.constant 0 : i32
    %c0_i32_1 = arith.constant 0 : i32
    return %c0_i32, %c0_i32_0 : i32, i32
  }
  func.func @transform_2(%arg0: i32) -> (i32, i32) {
    %c0_i32 = arith.constant 0 : i32
    %c0_i32_0 = arith.constant 0 : i32
    %c0_i32_1 = arith.constant 0 : i32
    return %c0_i32, %c0_i32_0 : i32, i32
  }
  func.func @transform_3(%arg0: i32) -> (i32, i32) {
    %c0_i32 = arith.constant 0 : i32
    %c0_i32_0 = arith.constant 0 : i32
    %c0_i32_1 = arith.constant 0 : i32
    return %c0_i32, %c0_i32_0 : i32, i32
  }
  func.func @transform_4(%arg0: i32) -> (i32, i32) {
    %c0_i32 = arith.constant 0 : i32
    %c0_i32_0 = arith.constant 0 : i32
    %c0_i32_1 = arith.constant 0 : i32
    return %c0_i32, %c0_i32_0 : i32, i32
  }
  func.func @transform_5(%arg0: i32) -> (i32, i32) {
    %c0_i32 = arith.constant 0 : i32
    %c0_i32_0 = arith.constant 0 : i32
    %c0_i32_1 = arith.constant 0 : i32
    return %c0_i32, %c0_i32_0 : i32, i32
  }
  func.func @transform_6(%arg0: i32) -> (i32, i32) {
    %c0_i32 = arith.constant 0 : i32
    %c0_i32_0 = arith.constant 0 : i32
    %c0_i32_1 = arith.constant 0 : i32
    return %c0_i32, %c0_i32_0 : i32, i32
  }
  func.func @transform_7(%arg0: i32) -> i32 {
    %c0_i32 = arith.constant 0 : i32
    %c0_i32_0 = arith.constant 0 : i32
    return %c0_i32 : i32
  }
  func.func @transform_8(%arg0: i32) -> (i32, i32) {
    %c0_i32 = arith.constant 0 : i32
    %c0_i32_0 = arith.constant 0 : i32
    %c0_i32_1 = arith.constant 0 : i32
    return %c0_i32, %c0_i32_0 : i32, i32
  }
  func.func @transform_9(%arg0: i32) -> (i32, i32) {
    %c0_i32 = arith.constant 0 : i32
    %c0_i32_0 = arith.constant 0 : i32
    %c0_i32_1 = arith.constant 0 : i32
    return %c0_i32, %c0_i32_0 : i32, i32
  }
  func.func @transform_10(%arg0: i32) -> (i32, i32) {
    %c0_i32 = arith.constant 0 : i32
    %c0_i32_0 = arith.constant 0 : i32
    %c0_i32_1 = arith.constant 0 : i32
    return %c0_i32, %c0_i32_0 : i32, i32
  }
}

</mosaic_0001>

<bundles_post_ra>
// kernel: tpu_custom_call.1
= control target key start
LH: loop header
LB: loop body
LE: loop exit
PB: predicated region body
PF: predicated region fallthrough
CT: control target
= control target key end

     0   :  { %15 = vsyncpa [#allocation4], 0  ;;  %s4963_s0 = inlined_call_operand.vmem [shape: f32[128,128], index: 0, kind: input, shape index: {}]   ;;  %s4964_s1 = inlined_call_operand.vmem [shape: f32[128,128], index: 1, kind: input, shape index: {}]   ;;  %s4965_s2 = inlined_call_operand.vmem [shape: f32[1,128], index: 2, kind: input, shape index: {}]   ;;  %s4966_s3 = inlined_call_operand.hbm [shape: bf16[256,128], index: 3, kind: input, shape index: {}]   ;;  %s4967_s4 = inlined_call_operand.hbm [shape: bf16[128,128], index: 4, kind: input, shape index: {}]   ;;  %s4968_s5 = inlined_call_operand.vmem [shape: f32[128,1], index: 5, kind: input, shape index: {}]   ;;  %s4969_s6 = inlined_call_operand.vmem [shape: f32[128,4], index: 6, kind: input, shape index: {}]   ;;  %s4970_s7 = inlined_call_operand.vmem [shape: f32[2], index: 7, kind: input, shape index: {}]   ;;  %s4971_s8 = inlined_call_operand.hbm [shape: f32[128,128], index: 8, kind: input, shape index: {}]   ;;  %s4972_s9 = inlined_call_operand.vmem [shape: f32[1,128], index: 9, kind: input, shape index: {}]   ;;  %s4973_s10 = inlined_call_operand.hbm [shape: f32[128,128], index: 10, kind: output, shape index: {}]  }
   0x1   :  { %16 = vsyncpa [#allocation8], 0 }
   0x2   :  { %17 = vsyncpa [#allocation6], 0 }
   0x3   :  { %18 = vsyncpa [#allocation5], 0  ;;  %s3811_s13 = smov [#allocation7]   ;;  %s3812_s15 = smov [#allocation3]  }
   0x4   :  { %s42_s14 = sshll.u32 %s3811_s13, 4  ;;  %s30_s16 = sshll.u32 %s3812_s15, 4  ;;  %s43_s14 = int_to_ptr.vmem [resolvable:$true] %s42_s14  ;;  %s3882_s16 = int_to_ptr.vmem [resolvable:$true] %s30_s16 }
   0x5   :  { %s3701_s19 = scalar_lea.hbm %s4967_s4, 1024 }
   0x6   :  { %p3702_p0 = scmp.ne.s32.totalorder %s4967_s4, %s3701_s19  ;;  %p3705_p1 = scmp.lt.u32.totalorder %s3701_s19, %s4967_s4 }
   0x8   :  { %p3707_p2 = pnand %p3705_p1, %p3702_p0 }
   0xa   :  { %3710 = shalt.err (!%p3707_p2)
}
   0xb   :  { %s3711_s24 = scalar_lea.vmem %s43_s14, 1024  ;;  %p3716_p4 = scmp.lt.s32.totalorder %s43_s14, %s43_s14 }
   0xc   :  { %p3712_p3 = scmp.ne.s32.totalorder %s43_s14, %s3711_s24  ;;  %p3717_p5 = scmp.lt.s32.totalorder %s3711_s24, %s3711_s24 }
   0xe   :  { %p3718_p6 = por %p3717_p5, %p3716_p4 }
  0x10   :  { %p3719_p7 = pnand %p3718_p6, %p3712_p3 }
  0x12   :  { %3722 = shalt.err (!%p3719_p7)
}
  0x13   :  { %s3813_s25 = smov 64   ;;  %s3814_s26 = smov 4  }
  0x14   :  { %48 = dma.hbm_to_vmem [thread:$0]  %s4967_s4, 1024, %s43_s14, [#allocation8], %s3813_s25, %s3813_s25, %s3814_s26  }
  0x15   :  { %s3723_s11 = scalar_lea.hbm %s4966_s3, 2048 }
  0x16   :  { %p3724_p8 = scmp.ne.s32.totalorder %s4966_s3, %s3723_s11  ;;  %p3727_p9 = scmp.lt.u32.totalorder %s3723_s11, %s4966_s3 }
  0x18   :  { %p3729_p10 = pnand %p3727_p9, %p3724_p8 }
  0x1a   :  { %3732 = shalt.err (!%p3729_p10)
}
  0x1b   :  { %s3733_s18 = scalar_lea.vmem %s3882_s16, 2048  ;;  %p3738_p12 = scmp.lt.s32.totalorder %s3882_s16, %s3882_s16 }
  0x1c   :  { %p3734_p11 = scmp.ne.s32.totalorder %s3882_s16, %s3733_s18  ;;  %p3739_p13 = scmp.lt.s32.totalorder %s3733_s18, %s3733_s18 }
  0x1e   :  { %p3740_p0 = por %p3739_p13, %p3738_p12 }
  0x20   :  { %p3741_p1 = pnand %p3740_p0, %p3734_p11 }
  0x22   :  { %3744 = shalt.err (!%p3741_p1)
}
  0x23   :  { %36 = dma.hbm_to_vmem [thread:$0]  %s4966_s3, 2048, %s3882_s16, [#allocation4], %s3813_s25, %s3813_s25, %s3814_s26  }
  0x24   :  { %s59_s21 = sshll.u32 %s4970_s7, 4  ;;  %s60_s21 = int_to_ptr.vmem [resolvable:$true] %s59_s21 }
  0x25   :  { %s3745_s22 = scalar_lea.vmem %s60_s21, 16  ;;  %p3750_p3 = scmp.lt.s32.totalorder %s60_s21, %s60_s21 }
  0x26   :  { %p3746_p2 = scmp.ne.s32.totalorder %s60_s21, %s3745_s22  ;;  %p3751_p4 = scmp.lt.s32.totalorder %s3745_s22, %s3745_s22 }
  0x28   :  { %p3752_p5 = por %p3751_p4, %p3750_p3 }
  0x2a   :  { %p3753_p6 = pnand %p3752_p5, %p3746_p2 }
  0x2c   :  { %3756 = shalt.err (!%p3753_p6)
}
  0x2d   :  { %s3815_s23 = smov [#allocation9]   ;;  %s3816_s24 = smov [#allocation10]  }
  0x2e   :  { %62 = dma.vmem_to_smem %s60_s21, 16, %s3815_s23, [#allocation6]  }
  0x2f   :  { %s68_s27 = sshll.u32 %s3816_s24, 4  ;;  %s3757_s3 = scalar_lea.hbm %s4971_s8, 2048  ;;  %s69_s27 = int_to_ptr.vmem [resolvable:$true] %s68_s27 }
  0x30   :  { %p3758_p7 = scmp.ne.s32.totalorder %s4971_s8, %s3757_s3  ;;  %p3761_p8 = scmp.lt.u32.totalorder %s3757_s3, %s4971_s8 }
  0x32   :  { %p3763_p9 = pnand %p3761_p8, %p3758_p7 }
  0x34   :  { %3766 = shalt.err (!%p3763_p9)
}
  0x35   :  { %s3767_s30 = scalar_lea.vmem %s69_s27, 2048  ;;  %p3772_p11 = scmp.lt.s32.totalorder %s69_s27, %s69_s27 }
  0x36   :  { %p3768_p10 = scmp.ne.s32.totalorder %s69_s27, %s3767_s30  ;;  %p3773_p12 = scmp.lt.s32.totalorder %s3767_s30, %s3767_s30 }
  0x38   :  { %p3774_p13 = por %p3773_p12, %p3772_p11 }
  0x3a   :  { %p3775_p0 = pnand %p3774_p13, %p3768_p10 }
  0x3c   :  { %3778 = shalt.err (!%p3775_p0)
}
  0x3d   :  { %s3817_s11 = smov 128   ;;  %s3818_s12 = smov 8  }
  0x3e   :  { %74 = dma.hbm_to_vmem [thread:$0]  %s4971_s8, 2048, %s69_s27, [#allocation8], %s3817_s11, %s3817_s11, %s3818_s12  }
  0x3f   :  { %3801 = dma.done.wait [#allocation4], 2048  }
  0x40   :  { %3802 = vsyncadd [#allocation4], 4294965248 }
  0x41   :  { %3803 = dma.done.wait [#allocation8], 1024  }
  0x42   :  { %3804 = vsyncadd [#allocation8], 4294966272 }
  0x43   :  { %3805 = dma.done.wait [#allocation6], 16  }
  0x44   :  { %3806 = vsyncadd [#allocation6], 4294967280 }
  0x45   :  { %3807 = dma.done.wait [#allocation8], 2048  }
  0x46   :  { %3808 = vsyncadd [#allocation8], 4294965248 }
  0x47   :  { %89 = sfence }
  0x48   :  { %v107_v0 = vld [vmem:[%s4964_s1] sm:$0xff]  ;;  %v108_v1 = vld [vmem:[%s4964_s1 + $0x8] sm:$0xff]  ;;  %v109_v2 = vld [vmem:[%s4964_s1 + $0x10] sm:$0xff]  ;;  %s3819_s23 = smov 32   ;;  %vm572_vm0 = vcmask 269568   ;;  %s3820_s26 = smov 33  }
  0x49   :  { %v3325_v3 = vpack.c.bf16 %v108_v1, %v107_v0  ;;  %v110_v4 = vld [vmem:[%s4964_s1 + $0x18] sm:$0xff]  ;;  %v111_v6 = vld [vmem:[%s4964_s1 + $0x20] sm:$0xff]  ;;  %v112_v7 = vld [vmem:[%s4964_s1 + $0x28] sm:$0xff]  ;;  %vm621_vm1 = vcmask 285960   ;;  %s975_s16 = sld [smem:[#allocation9]]  ;;  %s3824_s25 = smov 126  }
  0x4a   :  { %v3329_v5 = vpack.c.bf16 %v110_v4, %v109_v2  ;;  %v3333_v8 = vpack.c.bf16 %v112_v7, %v111_v6  ;;  %v91_v9 = vld [vmem:[%s4963_s0] sm:$0xff]  ;;  %v113_v10 = vld [vmem:[%s4964_s1 + $0x30] sm:$0xff]  ;;  %v114_v11 = vld [vmem:[%s4964_s1 + $0x38] sm:$0xff] }
  0x4b   :  { %3326 = vmatprep.subr.bf16.mxu0 %v3325_v3  ;;  %2973 = vmatprep.mubr.f32.mxu0 %v91_v9  ;;  %v3337_v12 = vpack.c.bf16 %v114_v11, %v113_v10  ;;  %v115_v13 = vld [vmem:[%s4964_s1 + $0x40] sm:$0xff]  ;;  %v116_v14 = vld [vmem:[%s4964_s1 + $0x48] sm:$0xff]  ;;  %v365_v17 = vld [vmem:[%s4969_s6 + $0x10] sm:$0xff] }
  0x4c   :  { %3328 = vmatpush3.bf16.msra.mxu0 %v3325_v3  ;;  %v3967_v15 = vld [vmem:[%s4969_s6] sm:$0xff]  ;;  %v3972_v16 = vld [vmem:[%s4969_s6 + $0x8] sm:$0xff]  ;;  %v366_v18 = vld [vmem:[%s4969_s6 + $0x18] sm:$0xff]  ;;  %v3341_v22 = vpack.c.bf16 %v116_v14, %v115_v13 }
  0x4d   :  { %3330 = vmatprep.subr.bf16.mxu0 %v3329_v5  ;;  %v3357_v20 = vpack.c.bf16 %v3972_v16, %v3967_v15  ;;  %v3361_v21 = vpack.c.bf16 %v366_v18, %v365_v17  ;;  %v367_v23 = vld [vmem:[%s4969_s6 + $0x20] sm:$0xff]  ;;  %v368_v24 = vld [vmem:[%s4969_s6 + $0x28] sm:$0xff]  ;;  %v117_v25 = vld [vmem:[%s4964_s1 + $0x50] sm:$0xff] }
  0x4e   :  { %v118_v26 = vld [vmem:[%s4964_s1 + $0x58] sm:$0xff]  ;;  %v369_v27 = vld [vmem:[%s4969_s6 + $0x30] sm:$0xff]  ;;  %v119_v29 = vld [vmem:[%s4964_s1 + $0x60] sm:$0xff]  ;;  %v3365_v31 = vpack.c.bf16 %v368_v24, %v367_v23 }
  0x4f   :  { %3358 = vmatprep.subr.bf16.mxu1 %v3357_v20  ;;  %v370_v28 = vld [vmem:[%s4969_s6 + $0x38] sm:$0xff]  ;;  %v120_v30 = vld [vmem:[%s4964_s1 + $0x68] sm:$0xff]  ;;  %v3345_v32 = vpack.c.bf16 %v118_v26, %v117_v25  ;;  %v371_v33 = vld [vmem:[%s4969_s6 + $0x40] sm:$0xff] }
  0x50   :  { %3332 = vmatpush3.bf16.msra.mxu0 %v3329_v5  ;;  %3360 = vmatpush3.bf16.msra.mxu1 %v3357_v20  ;;  %v372_v34 = vld [vmem:[%s4969_s6 + $0x48] sm:$0xff]  ;;  %v121_v35 = vld [vmem:[%s4964_s1 + $0x70] sm:$0xff]  ;;  %v122_v36 = vld [vmem:[%s4964_s1 + $0x78] sm:$0xff]  ;;  %v3369_v37 = vpack.c.bf16 %v370_v28, %v369_v27  ;;  %v3349_v38 = vpack.c.bf16 %v120_v30, %v119_v29 }
  0x51   :  { %3334 = vmatprep.subr.bf16.mxu0 %v3333_v8  ;;  %3362 = vmatprep.subr.bf16.mxu1 %v3361_v21  ;;  %v373_v39 = vld [vmem:[%s4969_s6 + $0x50] sm:$0xff]  ;;  %v374_v40 = vld [vmem:[%s4969_s6 + $0x58] sm:$0xff]  ;;  %v3373_v41 = vpack.c.bf16 %v372_v34, %v371_v33  ;;  %v3353_v42 = vpack.c.bf16 %v122_v36, %v121_v35  ;;  %v375_v43 = vld [vmem:[%s4969_s6 + $0x60] sm:$0xff] }
  0x52   :  { %v376_v44 = vld [vmem:[%s4969_s6 + $0x68] sm:$0xff]  ;;  %v3377_v45 = vpack.c.bf16 %v374_v40, %v373_v39  ;;  %v93_v48 = vld [vmem:[%s4963_s0 + $0x10] sm:$0xff]  ;;  %v94_v49 = vld [vmem:[%s4963_s0 + $0x18] sm:$0xff] }
  0x53   :  { %v92_v46 = vld [vmem:[%s4963_s0 + $0x8] sm:$0xff]  ;;  %v3381_v47 = vpack.c.bf16 %v376_v44, %v375_v43  ;;  %v95_v50 = vld [vmem:[%s4963_s0 + $0x20] sm:$0xff]  ;;  %v97_v52 = vld [vmem:[%s4963_s0 + $0x30] sm:$0xff] }
  0x54   :  { %3336 = vmatpush3.bf16.msra.mxu0 %v3333_v8  ;;  %3364 = vmatpush3.bf16.msra.mxu1 %v3361_v21  ;;  %v96_v51 = vld [vmem:[%s4963_s0 + $0x28] sm:$0xff]  ;;  %v98_v53 = vld [vmem:[%s4963_s0 + $0x38] sm:$0xff]  ;;  %v99_v54 = vld [vmem:[%s4963_s0 + $0x40] sm:$0xff] }
  0x55   :  { %3338 = vmatprep.subr.bf16.mxu0 %v3337_v12  ;;  %3366 = vmatprep.subr.bf16.mxu1 %v3365_v31  ;;  %v100_v55 = vld [vmem:[%s4963_s0 + $0x48] sm:$0xff]  ;;  %v101_v56 = vld [vmem:[%s4963_s0 + $0x50] sm:$0xff]  ;;  %v102_v57 = vld [vmem:[%s4963_s0 + $0x58] sm:$0xff] }
  0x56   :  { %v103_v58 = vld [vmem:[%s4963_s0 + $0x60] sm:$0xff]  ;;  %v104_v59 = vld [vmem:[%s4963_s0 + $0x68] sm:$0xff]  ;;  %v105_v60 = vld [vmem:[%s4963_s0 + $0x70] sm:$0xff] }
  0x57   :  { %v106_v61 = vld [vmem:[%s4963_s0 + $0x78] sm:$0xff]  ;;  %v4080_v62 = vld [vmem:[%s4969_s6 + $0x70] sm:$0xff]  ;;  %v4092_v1 = vld [vmem:[%s4968_s5] sm:$0xff] }
  0x58   :  { %3340 = vmatpush3.bf16.msra.mxu0 %v3337_v12  ;;  %3368 = vmatpush3.bf16.msra.mxu1 %v3365_v31  ;;  %v4085_v63 = vld [vmem:[%s4969_s6 + $0x78] sm:$0xff]  ;;  %v4097_v2 = vld [vmem:[%s4968_s5 + $0x8] sm:$0xff]  ;;  %v4105_v4 = vld [vmem:[%s4965_s2] ss:$0 sm:$0xff] }
  0x59   :  { %3342 = vmatprep.subr.bf16.mxu0 %v3341_v22  ;;  %3370 = vmatprep.subr.bf16.mxu1 %v3369_v37  ;;  %v3385_v0 = vpack.c.bf16 %v4085_v63, %v4080_v62  ;;  %v355_v3 = vpack.c.bf16 %v4097_v2, %v4092_v1 }
  0x5b   :  { %548 = vrot.lane.b32.xlu0 %v355_v3, %s3819_s23 }
  0x5c   :  { %3344 = vmatpush3.bf16.msra.mxu0 %v3341_v22  ;;  %3372 = vmatpush3.bf16.msra.mxu1 %v3369_v37 }
  0x5d   :  { %3346 = vmatprep.subr.bf16.mxu0 %v3345_v32  ;;  %3374 = vmatprep.subr.bf16.mxu1 %v3373_v41 }
  0x60   :  { %3348 = vmatpush3.bf16.msra.mxu0 %v3345_v32  ;;  %3376 = vmatpush3.bf16.msra.mxu1 %v3373_v41 }
  0x61   :  { %3350 = vmatprep.subr.bf16.mxu0 %v3349_v38  ;;  %3378 = vmatprep.subr.bf16.mxu1 %v3377_v45 }
  0x64   :  { %3352 = vmatpush3.bf16.msra.mxu0 %v3349_v38  ;;  %3380 = vmatpush3.bf16.msra.mxu1 %v3377_v45 }
  0x65   :  { %3354 = vmatprep.subr.bf16.mxu0 %v3353_v42  ;;  %3382 = vmatprep.subr.bf16.mxu1 %v3381_v47 }
  0x68   :  { %3356 = vmatpush3.bf16.msra.mxu0 %v3353_v42  ;;  %3384 = vmatpush3.bf16.msra.mxu1 %v3381_v47 }
  0x69   :  { %3386 = vmatprep.subr.bf16.mxu1 %v3385_v0 }
  0x6b   :  { %2974 = vmatmul.mubr.f32.vlgmr.msra.gmra.mrb[0].mxu0 %v92_v46 }
  0x6c   :  { %2976 = vmatprep.mubr.f32.mxu0 %v93_v48  ;;  %3388 = vmatpush3.bf16.msra.mxu1 %v3385_v0 }
  0x6f   :  { %2977 = vmatmul.mubr.f32.gmra.mrb[2].mxu0 %v94_v49 }
  0x70   :  { %2979 = vmatprep.mubr.f32.mxu0 %v95_v50 }
  0x73   :  { %2980 = vmatmul.mubr.f32.gmra.mrb[4].mxu0 %v96_v51 }
  0x74   :  { %2982 = vmatprep.mubr.f32.mxu0 %v97_v52 }
  0x77   :  { %2983 = vmatmul.mubr.f32.gmra.mrb[6].mxu0 %v98_v53 }
  0x78   :  { %2985 = vmatprep.mubr.f32.mxu0 %v99_v54 }
  0x7b   :  { %2986 = vmatmul.mubr.f32.gmra.mrb[8].mxu0 %v100_v55 }
  0x7c   :  { %2988 = vmatprep.mubr.f32.mxu0 %v101_v56 }
  0x7f   :  { %2989 = vmatmul.mubr.f32.gmra.mrb[10].mxu0 %v102_v57 }
  0x80   :  { %2991 = vmatprep.mubr.f32.mxu0 %v103_v58 }
  0x83   :  { %2992 = vmatmul.mubr.f32.gmra.mrb[12].mxu0 %v104_v59 }
  0x84   :  { %2994 = vmatprep.mubr.f32.mxu0 %v105_v60 }
  0x87   :  { %2995 = vmatmul.mubr.f32.gmra.mrb[14].mxu0 %v106_v61 }
 0x13e   :  { %v2975_v5 = vpop.f32.mrb[0].mxu0 }
 0x13f   :  { %v202_v6 = vadd.f32 %v2975_v5, %v4105_v4  ;;  %v196_v7 = vpop.f32.mrb[1].mxu0  ;;  %v4195_v5 = vld [vmem:[%s4968_s5 + $0x18] sm:$0xff] }
 0x140   :  { %v197_v8 = vadd.f32 %v4105_v4, %v196_v7  ;;  %v4200_v7 = vpop.permute.xlu0 %548 }
 0x141   :  { %v4109_v9 = vmax.f32 %v202_v6, 0.0  ;;  %5019 = vst [vmem:[#allocation30_spill] sm:$0xff] %v4200_v7 }
 0x142   :  { %v4111_v10 = vmax.f32 %v197_v8, 0.0  ;;  %v2978_v11 = vpop.f32.mrb[2].mxu0 }
 0x143   :  { %5006 = vst [vmem:[#allocation17_spill] sm:$0xff] %v4109_v9  ;;  %v212_v12 = vadd.f32 %v2978_v11, %v4105_v4  ;;  %v206_v13 = vpop.f32.mrb[3].mxu0 }
 0x144   :  { %v524_v14 = vpack.c.bf16 %v4109_v9, %v4111_v10  ;;  %v207_v17 = vadd.f32 %v4105_v4, %v206_v13  ;;  %3029 = vmatprep.mubr.f32.mxu1 %v4111_v10  ;;  %v4211_v13 = vld [vmem:[%s4968_s5 + $0x20] sm:$0xff] }
 0x145   :  { %v4118_v18 = vmax.f32 %v212_v12, 0.0  ;;  %3030 = vmatmul.mubr.f32.vlgmr.msra.gmra.mrb[0].mxu1 %v4109_v9 }
 0x146   :  { %532 = vst [vmem:[#allocation2] sm:$0xff] %v524_v14  ;;  %v4121_v20 = vmax.f32 %v207_v17, 0.0  ;;  %v2981_v21 = vpop.f32.mrb[4].mxu0  ;;  %v4216_v14 = vld [vmem:[%s4968_s5 + $0x28] sm:$0xff] }
 0x147   :  { %v222_v22 = vadd.f32 %v2981_v21, %v4105_v4  ;;  %v216_v23 = vpop.f32.mrb[5].mxu0  ;;  %573 = vst.msk [vmem:[#allocation2] sm:$0xff] %vm572_vm0, %v4200_v7 }
 0x148   :  { %v525_v24 = vpack.c.bf16 %v4118_v18, %v4121_v20  ;;  %v217_v25 = vadd.f32 %v4105_v4, %v216_v23  ;;  %3032 = vmatprep.mubr.f32.mxu1 %v4121_v20 }
 0x149   :  { %v4128_v26 = vmax.f32 %v222_v22, 0.0  ;;  %3033 = vmatmul.mubr.f32.gmra.mrb[2].mxu1 %v4118_v18  ;;  %v357_v22 = vpack.c.bf16 %v4216_v14, %v4211_v13 }
 0x14a   :  { %533 = vst [vmem:[#allocation2 + $0x8] sm:$0xff] %v525_v24  ;;  %v4131_v27 = vmax.f32 %v217_v25, 0.0  ;;  %v2984_v28 = vpop.f32.mrb[6].mxu0  ;;  %v4224_v24 = vld [vmem:[%s4968_s5 + $0x30] sm:$0xff]  ;;  %v4229_v25 = vld [vmem:[%s4968_s5 + $0x38] sm:$0xff] }
 0x14b   :  { %5007 = vst [vmem:[#allocation18_spill] sm:$0xff] %v4128_v26  ;;  %v232_v29 = vadd.f32 %v2984_v28, %v4105_v4  ;;  %v226_v30 = vpop.f32.mrb[7].mxu0 }
 0x14c   :  { %5008 = vst [vmem:[#allocation19_spill] sm:$0xff] %v4131_v27  ;;  %v526_v31 = vpack.c.bf16 %v4128_v26, %v4131_v27  ;;  %v227_v32 = vadd.f32 %v4105_v4, %v226_v30  ;;  %3035 = vmatprep.mubr.f32.mxu1 %v4131_v27  ;;  %v358_v30 = vpack.c.bf16 %v4229_v25, %v4224_v24 }
 0x14d   :  { %v4138_v33 = vmax.f32 %v232_v29, 0.0  ;;  %3036 = vmatmul.mubr.f32.gmra.mrb[4].mxu1 %v4128_v26 }
 0x14e   :  { %534 = vst [vmem:[#allocation2 + $0x10] sm:$0xff] %v526_v31  ;;  %v4141_v34 = vmax.f32 %v227_v32, 0.0  ;;  %v2987_v35 = vpop.f32.mrb[8].mxu0  ;;  %v4238_v32 = vld [vmem:[%s4968_s5 + $0x40] sm:$0xff] }
 0x14f   :  { %5009 = vst [vmem:[#allocation20_spill] sm:$0xff] %v4138_v33  ;;  %v242_v36 = vadd.f32 %v2987_v35, %v4105_v4  ;;  %v236_v37 = vpop.f32.mrb[9].mxu0  ;;  %v4243_v35 = vld [vmem:[%s4968_s5 + $0x48] sm:$0xff] }
 0x150   :  { %5010 = vst [vmem:[#allocation21_spill] sm:$0xff] %v4141_v34  ;;  %v527_v38 = vpack.c.bf16 %v4138_v33, %v4141_v34  ;;  %v237_v39 = vadd.f32 %v4105_v4, %v236_v37  ;;  %3038 = vmatprep.mubr.f32.mxu1 %v4141_v34 }
 0x151   :  { %v4148_v40 = vmax.f32 %v242_v36, 0.0  ;;  %3039 = vmatmul.mubr.f32.gmra.mrb[6].mxu1 %v4138_v33 }
 0x152   :  { %535 = vst [vmem:[#allocation2 + $0x18] sm:$0xff] %v527_v38  ;;  %v4151_v41 = vmax.f32 %v237_v39, 0.0  ;;  %v2990_v42 = vpop.f32.mrb[10].mxu0  ;;  %v359_v38 = vpack.c.bf16 %v4243_v35, %v4238_v32 }
 0x153   :  { %5011 = vst [vmem:[#allocation22_spill] sm:$0xff] %v4148_v40  ;;  %v252_v43 = vadd.f32 %v2990_v42, %v4105_v4  ;;  %v246_v44 = vpop.f32.mrb[11].mxu0  ;;  %v4252_v42 = vld [vmem:[%s4968_s5 + $0x50] sm:$0xff] }
 0x154   :  { %5012 = vst [vmem:[#allocation23_spill] sm:$0xff] %v4151_v41  ;;  %v528_v45 = vpack.c.bf16 %v4148_v40, %v4151_v41  ;;  %v247_v46 = vadd.f32 %v4105_v4, %v246_v44  ;;  %3041 = vmatprep.mubr.f32.mxu1 %v4151_v41 }
 0x155   :  { %v4158_v47 = vmax.f32 %v252_v43, 0.0  ;;  %3042 = vmatmul.mubr.f32.gmra.mrb[8].mxu1 %v4148_v40  ;;  %v4257_v43 = vld [vmem:[%s4968_s5 + $0x58] sm:$0xff] }
 0x156   :  { %536 = vst [vmem:[#allocation2 + $0x20] sm:$0xff] %v528_v45  ;;  %v4161_v48 = vmax.f32 %v247_v46, 0.0  ;;  %v2993_v49 = vpop.f32.mrb[12].mxu0  ;;  %v360_v46 = vpack.c.bf16 %v4257_v43, %v4252_v42 }
 0x157   :  { %5013 = vst [vmem:[#allocation24_spill] sm:$0xff] %v4158_v47  ;;  %v262_v50 = vadd.f32 %v2993_v49, %v4105_v4  ;;  %v256_v51 = vpop.f32.mrb[13].mxu0 }
 0x158   :  { %5014 = vst [vmem:[#allocation25_spill] sm:$0xff] %v4161_v48  ;;  %v529_v52 = vpack.c.bf16 %v4158_v47, %v4161_v48  ;;  %v257_v53 = vadd.f32 %v4105_v4, %v256_v51  ;;  %3044 = vmatprep.mubr.f32.mxu1 %v4161_v48  ;;  %v4271_v51 = vld [vmem:[%s4968_s5 + $0x68] sm:$0xff] }
 0x159   :  { %v4168_v54 = vmax.f32 %v262_v50, 0.0  ;;  %3045 = vmatmul.mubr.f32.gmra.mrb[10].mxu1 %v4158_v47  ;;  %v4266_v50 = vld [vmem:[%s4968_s5 + $0x60] sm:$0xff] }
 0x15a   :  { %537 = vst [vmem:[#allocation2 + $0x28] sm:$0xff] %v529_v52  ;;  %v4171_v55 = vmax.f32 %v257_v53, 0.0  ;;  %v2996_v56 = vpop.f32.mrb[14].mxu0 }
 0x15b   :  { %5015 = vst [vmem:[#allocation26_spill] sm:$0xff] %v4168_v54  ;;  %v272_v57 = vadd.f32 %v2996_v56, %v4105_v4  ;;  %v266_v58 = vpop.f32.mrb[15].mxu0  ;;  %v361_v56 = vpack.c.bf16 %v4271_v51, %v4266_v50 }
 0x15c   :  { %5016 = vst [vmem:[#allocation27_spill] sm:$0xff] %v4171_v55  ;;  %v530_v59 = vpack.c.bf16 %v4168_v54, %v4171_v55  ;;  %v267_v60 = vadd.f32 %v4105_v4, %v266_v58  ;;  %3047 = vmatprep.mubr.f32.mxu1 %v4171_v55  ;;  %v4190_v4 = vld [vmem:[%s4968_s5 + $0x10] sm:$0xff]  ;;  %v4419_v55 = vstv %s975_s16 }
 0x15d   :  { %v4178_v61 = vmax.f32 %v272_v57, 0.0  ;;  %3048 = vmatmul.mubr.f32.gmra.mrb[12].mxu1 %v4168_v54  ;;  %v356_v6 = vpack.c.bf16 %v4195_v5, %v4190_v4  ;;  %v4280_v58 = vld [vmem:[%s4968_s5 + $0x70] sm:$0xff] }
 0x15e   :  { %538 = vst [vmem:[#allocation2 + $0x30] sm:$0xff] %v530_v59  ;;  %v4181_v0 = vmax.f32 %v267_v60, 0.0  ;;  %v4285_v59 = vld [vmem:[%s4968_s5 + $0x78] sm:$0xff]  ;;  %s3821_s5 = smov 1  }
 0x15f   :  { %5017 = vst [vmem:[#allocation28_spill] sm:$0xff] %v4178_v61  ;;  %550 = vrot.lane.b32.xlu1 %v356_v6, %s3819_s23  ;;  %v362_v6 = vpack.c.bf16 %v4285_v59, %v4280_v58 }
 0x160   :  { %5018 = vst [vmem:[#allocation29_spill] sm:$0xff] %v4181_v0  ;;  %v531_v3 = vpack.c.bf16 %v4178_v61, %v4181_v0  ;;  %3050 = vmatprep.mubr.f32.mxu1 %v4181_v0 }
 0x161   :  { %3051 = vmatmul.mubr.f32.gmra.mrb[14].mxu1 %v4178_v61 }
 0x162   :  { %539 = vst [vmem:[#allocation2 + $0x38] sm:$0xff] %v531_v3 }
 0x1d1   :  { %v4204_v8 = vpop.permute.xlu1 %550 }
 0x1d2   :  { %5020 = vst [vmem:[#allocation31_spill] sm:$0xff] %v4204_v8  ;;  %574 = vst.msk [vmem:[#allocation2 + $0x8] sm:$0xff] %vm572_vm0, %v4204_v8 }
 0x218   :  { %v3031_v11 = vpop.f32.mrb[0].mxu1 }
 0x219   :  { %v445_v12 = vpop.f32.mrb[1].mxu1 }
 0x21a   :  { %v581_v17 = vpack.c.bf16 %v3031_v11, %v445_v12 }
 0x21c   :  { %597 = vrot.lane.b32.xlu0 %v581_v17, %s3820_s26  ;;  %v3034_v21 = vpop.f32.mrb[2].mxu1 }
 0x21d   :  { %v455_v23 = vpop.f32.mrb[3].mxu1 }
 0x21e   :  { %v582_v28 = vpack.c.bf16 %v3034_v21, %v455_v23  ;;  %v4293_v21 = vld [vmem:[#allocation3] sm:$0xff]  }
 0x21f   :  { %3069 = vmatprep.mubr.bf16.mxu0 %v4293_v21 }
 0x220   :  { %599 = vrot.lane.b32.xlu1 %v582_v28, %s3820_s26  ;;  %v3037_v29 = vpop.f32.mrb[4].mxu1  ;;  %552 = vrot.lane.b32.xlu0 %v357_v22, %s3819_s23 }
 0x221   :  { %v465_v31 = vpop.f32.mrb[5].mxu1 }
 0x222   :  { %v583_v36 = vpack.c.bf16 %v3037_v29, %v465_v31 }
 0x224   :  { %601 = vrot.lane.b32.xlu1 %v583_v36, %s3820_s26  ;;  %v3040_v37 = vpop.f32.mrb[6].mxu1  ;;  %554 = vrot.lane.b32.xlu0 %v358_v30, %s3819_s23 }
 0x225   :  { %v475_v39 = vpop.f32.mrb[7].mxu1 }
 0x226   :  { %v584_v44 = vpack.c.bf16 %v3040_v37, %v475_v39 }
 0x228   :  { %603 = vrot.lane.b32.xlu1 %v584_v44, %s3820_s26  ;;  %v3043_v45 = vpop.f32.mrb[8].mxu1  ;;  %556 = vrot.lane.b32.xlu0 %v359_v38, %s3819_s23 }
 0x229   :  { %v485_v49 = vpop.f32.mrb[9].mxu1 }
 0x22a   :  { %v585_v52 = vpack.c.bf16 %v3043_v45, %v485_v49 }
 0x22c   :  { %605 = vrot.lane.b32.xlu1 %v585_v52, %s3820_s26  ;;  %v3046_v53 = vpop.f32.mrb[10].mxu1  ;;  %558 = vrot.lane.b32.xlu0 %v360_v46, %s3819_s23 }
 0x22d   :  { %v495_v57 = vpop.f32.mrb[11].mxu1 }
 0x22e   :  { %v586_v60 = vpack.c.bf16 %v3046_v53, %v495_v57 }
 0x230   :  { %607 = vrot.lane.b32.xlu1 %v586_v60, %s3820_s26  ;;  %v3049_v3 = vpop.f32.mrb[12].mxu1  ;;  %560 = vrot.lane.b32.xlu0 %v361_v56, %s3819_s23 }
 0x231   :  { %v505_v11 = vpop.f32.mrb[13].mxu1 }
 0x232   :  { %v587_v12 = vpack.c.bf16 %v3049_v3, %v505_v11 }
 0x234   :  { %609 = vrot.lane.b32.xlu1 %v587_v12, %s3820_s26  ;;  %v3052_v17 = vpop.f32.mrb[14].mxu1  ;;  %562 = vrot.lane.b32.xlu0 %v362_v6, %s3819_s23  ;;  %s3822_s23 = smov 127  }
 0x235   :  { %v515_v22 = vpop.f32.mrb[15].mxu1 }
 0x236   :  { %v588_v23 = vpack.c.bf16 %v3052_v17, %v515_v22  ;;  %v3516_v22 = vld [vmem:[#allocation3 + $0x8] sm:$0xff]  }
 0x238   :  { %611 = vrot.lane.b32.xlu1 %v588_v23, %s3820_s26  ;;  %v3517_v23 = vld [vmem:[#allocation3 + $0x10] sm:$0xff]  }
 0x28e   :  { %v598_v28 = vpop.permute.xlu0 %597 }
 0x28f   :  { %622 = vst.msk [vmem:[#allocation2] sm:$0xff] %vm621_vm1, %v598_v28  ;;  %v3518_v28 = vld [vmem:[#allocation3 + $0x18] sm:$0xff]  }
 0x292   :  { %v600_v29 = vpop.permute.xlu1 %599  ;;  %v4298_v30 = vpop.permute.xlu0 %552 }
 0x293   :  { %5021 = vst [vmem:[#allocation32_spill] sm:$0xff] %v4298_v30  ;;  %623 = vst.msk [vmem:[#allocation2 + $0x8] sm:$0xff] %vm621_vm1, %v600_v29  ;;  %v3519_v29 = vld [vmem:[#allocation3 + $0x20] sm:$0xff]  }
 0x294   :  { %575 = vst.msk [vmem:[#allocation2 + $0x10] sm:$0xff] %vm572_vm0, %v4298_v30 }
 0x296   :  { %v602_v31 = vpop.permute.xlu1 %601  ;;  %v630_v36 = vld [vmem:[#allocation2] sm:$0xff]  ;;  %v4303_v37 = vpop.permute.xlu0 %554 }
 0x297   :  { %5022 = vst [vmem:[#allocation33_spill] sm:$0xff] %v4303_v37  ;;  %624 = vst.msk [vmem:[#allocation2 + $0x10] sm:$0xff] %vm621_vm1, %v602_v31  ;;  %3053 = vmatprep.subr.bf16.mxu0 %v630_v36  ;;  %v3520_v31 = vld [vmem:[#allocation3 + $0x28] sm:$0xff]  }
 0x298   :  { %576 = vst.msk [vmem:[#allocation2 + $0x18] sm:$0xff] %vm572_vm0, %v4303_v37  ;;  %3054 = vmatpush3.bf16.msra.mxu0 %v630_v36  ;;  %v3521_v36 = vld [vmem:[#allocation3 + $0x30] sm:$0xff]  }
 0x29a   :  { %v604_v38 = vpop.permute.xlu1 %603  ;;  %v631_v39 = vld [vmem:[#allocation2 + $0x8] sm:$0xff]  ;;  %v4308_v44 = vpop.permute.xlu0 %556 }
 0x29b   :  { %5023 = vst [vmem:[#allocation34_spill] sm:$0xff] %v4308_v44  ;;  %625 = vst.msk [vmem:[#allocation2 + $0x18] sm:$0xff] %vm621_vm1, %v604_v38  ;;  %3055 = vmatprep.subr.bf16.mxu0 %v631_v39  ;;  %v3522_v38 = vld [vmem:[#allocation3 + $0x38] sm:$0xff]  }
 0x29c   :  { %577 = vst.msk [vmem:[#allocation2 + $0x20] sm:$0xff] %vm572_vm0, %v4308_v44  ;;  %3056 = vmatpush3.bf16.msra.mxu0 %v631_v39  ;;  %v3523_v39 = vld [vmem:[#allocation3 + $0x40] sm:$0xff]  }
 0x29e   :  { %v606_v45 = vpop.permute.xlu1 %605  ;;  %v632_v46 = vld [vmem:[#allocation2 + $0x10] sm:$0xff]  ;;  %v4313_v49 = vpop.permute.xlu0 %558 }
 0x29f   :  { %5024 = vst [vmem:[#allocation35_spill] sm:$0xff] %v4313_v49  ;;  %626 = vst.msk [vmem:[#allocation2 + $0x20] sm:$0xff] %vm621_vm1, %v606_v45  ;;  %3057 = vmatprep.subr.bf16.mxu0 %v632_v46  ;;  %v3524_v45 = vld [vmem:[#allocation3 + $0x48] sm:$0xff]  }
 0x2a0   :  { %578 = vst.msk [vmem:[#allocation2 + $0x28] sm:$0xff] %vm572_vm0, %v4313_v49  ;;  %3058 = vmatpush3.bf16.msra.mxu0 %v632_v46  ;;  %v3525_v46 = vld [vmem:[#allocation3 + $0x50] sm:$0xff]  }
 0x2a2   :  { %v608_v52 = vpop.permute.xlu1 %607  ;;  %v633_v53 = vld [vmem:[#allocation2 + $0x18] sm:$0xff]  ;;  %v4318_v56 = vpop.permute.xlu0 %560 }
 0x2a3   :  { %5025 = vst [vmem:[#allocation36_spill] sm:$0xff] %v4318_v56  ;;  %627 = vst.msk [vmem:[#allocation2 + $0x28] sm:$0xff] %vm621_vm1, %v608_v52  ;;  %3059 = vmatprep.subr.bf16.mxu0 %v633_v53  ;;  %v3526_v52 = vld [vmem:[#allocation3 + $0x58] sm:$0xff]  }
 0x2a4   :  { %579 = vst.msk [vmem:[#allocation2 + $0x30] sm:$0xff] %vm572_vm0, %v4318_v56  ;;  %3060 = vmatpush3.bf16.msra.mxu0 %v633_v53  ;;  %v3527_v53 = vld [vmem:[#allocation3 + $0x60] sm:$0xff]  }
 0x2a6   :  { %v610_v57 = vpop.permute.xlu1 %609  ;;  %v634_v60 = vld [vmem:[#allocation2 + $0x20] sm:$0xff]  ;;  %v4323_v3 = vpop.permute.xlu0 %562 }
 0x2a7   :  { %5026 = vst [vmem:[#allocation37_spill] sm:$0xff] %v4323_v3  ;;  %628 = vst.msk [vmem:[#allocation2 + $0x30] sm:$0xff] %vm621_vm1, %v610_v57  ;;  %3061 = vmatprep.subr.bf16.mxu0 %v634_v60  ;;  %v3528_v57 = vld [vmem:[#allocation3 + $0x68] sm:$0xff]  }
 0x2a8   :  { %580 = vst.msk [vmem:[#allocation2 + $0x38] sm:$0xff] %vm572_vm0, %v4323_v3  ;;  %3062 = vmatpush3.bf16.msra.mxu0 %v634_v60  ;;  %v3529_v60 = vld [vmem:[#allocation3 + $0x70] sm:$0xff]   ;;  %v4979_v3 = vmov 33  }
 0x2a9   :  { %3469 = vset.pattern.permute.xlu0 %v4979_v3  ;;  %3470 = vset.pattern.permute.xlu1 %v4979_v3 }
 0x2aa   :  { %v612_v6 = vpop.permute.xlu1 %611  ;;  %v635_v11 = vld [vmem:[#allocation2 + $0x28] sm:$0xff] }
 0x2ab   :  { %629 = vst.msk [vmem:[#allocation2 + $0x38] sm:$0xff] %vm621_vm1, %v612_v6  ;;  %3063 = vmatprep.subr.bf16.mxu0 %v635_v11  ;;  %v3530_v6 = vld [vmem:[#allocation3 + $0x78] sm:$0xff]  }
 0x2ac   :  { %3064 = vmatpush3.bf16.msra.mxu0 %v635_v11 }
 0x2ae   :  { %v636_v12 = vld [vmem:[#allocation2 + $0x30] sm:$0xff] }
 0x2af   :  { %3065 = vmatprep.subr.bf16.mxu0 %v636_v12 }
 0x2b0   :  { %3066 = vmatpush3.bf16.msra.mxu0 %v636_v12 }
 0x2b2   :  { %v637_v17 = vld [vmem:[#allocation2 + $0x38] sm:$0xff] }
 0x2b3   :  { %3067 = vmatprep.subr.bf16.mxu0 %v637_v17 }
 0x2b4   :  { %3068 = vmatpush3.bf16.msra.mxu0 %v637_v17 }
 0x2b7   :  { %3070 = vmatmul.mubr.bf16.vlgmr.msra.gmra.mrb[16].mxu0 %v3516_v22 }
 0x2b8   :  { %3073 = vmatprep.mubr.bf16.mxu0 %v3517_v23 }
 0x2bf   :  { %3074 = vmatmul.mubr.bf16.gmra.mrb[20].mxu0 %v3518_v28 }
 0x2c0   :  { %3077 = vmatprep.mubr.bf16.mxu0 %v3519_v29 }
 0x2c7   :  { %3078 = vmatmul.mubr.bf16.gmra.mrb[24].mxu0 %v3520_v31 }
 0x2c8   :  { %3081 = vmatprep.mubr.bf16.mxu0 %v3521_v36 }
 0x2cf   :  { %3082 = vmatmul.mubr.bf16.gmra.mrb[28].mxu0 %v3522_v38 }
 0x2d0   :  { %3085 = vmatprep.mubr.bf16.mxu0 %v3523_v39 }
 0x2d7   :  { %3086 = vmatmul.mubr.bf16.gmra.mrb[32].mxu0 %v3524_v45 }
 0x2d8   :  { %3089 = vmatprep.mubr.bf16.mxu0 %v3525_v46 }
 0x2df   :  { %3090 = vmatmul.mubr.bf16.gmra.mrb[36].mxu0 %v3526_v52 }
 0x2e0   :  { %3093 = vmatprep.mubr.bf16.mxu0 %v3527_v53 }
 0x2e7   :  { %3094 = vmatmul.mubr.bf16.gmra.mrb[40].mxu0 %v3528_v57 }
 0x2e8   :  { %3097 = vmatprep.mubr.bf16.mxu0 %v3529_v60 }
 0x2ef   :  { %3098 = vmatmul.mubr.bf16.gmra.mrb[44].mxu0 %v3530_v6 }
 0x2f0   :  { %3205 = vmatprep.mubr.bf16.mxu0 %v4293_v21 }
 0x38a   :  { %v4330_v11 = vpop.f32.mrb[16].mxu0 }
 0x38b   :  { %1029 = vrot.lane.b32.xlu0 %v4330_v11, %s3821_s5  ;;  %v4334_v12 = vpop.f32.mrb[17].mxu0 }
 0x38c   :  { %v4336_v17 = vpop.f32.mrb[18].mxu0 }
 0x38d   :  { %1031 = vrot.lane.b32.xlu1 %v4336_v17, %s3821_s5  ;;  %v4340_v22 = vpop.f32.mrb[19].mxu0 }
 0x38f   :  { %1025 = vrot.lane.b32.xlu0 %v4334_v12, %s3821_s5 }
 0x391   :  { %1027 = vrot.lane.b32.xlu1 %v4340_v22, %s3821_s5 }
 0x392   :  { %v4346_v21 = vpop.f32.mrb[20].mxu0 }
 0x393   :  { %v4348_v23 = vpop.f32.mrb[21].mxu0 }
 0x394   :  { %1033 = vrot.lane.b32.xlu0 %v4348_v23, %s3821_s5  ;;  %v4352_v28 = vpop.f32.mrb[22].mxu0 }
 0x395   :  { %v4354_v29 = vpop.f32.mrb[23].mxu0 }
 0x396   :  { %1035 = vrot.lane.b32.xlu1 %v4354_v29, %s3821_s5 }
 0x39a   :  { %v4358_v31 = vpop.f32.mrb[24].mxu0 }
 0x39b   :  { %v4360_v36 = vpop.f32.mrb[25].mxu0 }
 0x39c   :  { %v4362_v38 = vpop.f32.mrb[26].mxu0 }
 0x39d   :  { %v4364_v39 = vpop.f32.mrb[27].mxu0 }
 0x3a2   :  { %v4366_v45 = vpop.f32.mrb[28].mxu0 }
 0x3a3   :  { %v4368_v46 = vpop.f32.mrb[29].mxu0 }
 0x3a4   :  { %v4370_v52 = vpop.f32.mrb[30].mxu0 }
 0x3a5   :  { %v4372_v53 = vpop.f32.mrb[31].mxu0 }
 0x3aa   :  { %v3087_v57 = vpop.f32.mrb[32].mxu0 }
 0x3ab   :  { %915 = vrot.lane.b32.xlu0 %v3087_v57, %s3822_s23  ;;  %v832_v60 = vpop.f32.mrb[33].mxu0 }
 0x3ac   :  { %v3088_v6 = vpop.f32.mrb[34].mxu0 }
 0x3ad   :  { %917 = vrot.lane.b32.xlu1 %v3088_v6, %s3822_s23  ;;  %v835_v19 = vpop.f32.mrb[35].mxu0 }
 0x3af   :  { %911 = vrot.lane.b32.xlu0 %v832_v60, %s3822_s23 }
 0x3b1   :  { %913 = vrot.lane.b32.xlu1 %v835_v19, %s3822_s23 }
 0x3b2   :  { %v3091_v56 = vpop.f32.mrb[36].mxu0 }
 0x3b3   :  { %923 = vrot.lane.b32.xlu0 %v3091_v56, %s3822_s23  ;;  %v848_v54 = vpop.f32.mrb[37].mxu0 }
 0x3b4   :  { %v3092_v61 = vpop.f32.mrb[38].mxu0 }
 0x3b5   :  { %925 = vrot.lane.b32.xlu1 %v3092_v61, %s3822_s23  ;;  %v851_v57 = vpop.f32.mrb[39].mxu0 }
 0x3b7   :  { %919 = vrot.lane.b32.xlu0 %v848_v54, %s3822_s23 }
 0x3b9   :  { %921 = vrot.lane.b32.xlu1 %v851_v57, %s3822_s23 }
 0x3ba   :  { %v3095_v60 = vpop.f32.mrb[40].mxu0 }
 0x3bb   :  { %931 = vrot.lane.b32.xlu0 %v3095_v60, %s3822_s23  ;;  %v864_v19 = vpop.f32.mrb[41].mxu0 }
 0x3bc   :  { %v3096_v6 = vpop.f32.mrb[42].mxu0 }
 0x3bd   :  { %933 = vrot.lane.b32.xlu1 %v3096_v6, %s3822_s23  ;;  %v867_v0 = vpop.f32.mrb[43].mxu0 }
 0x3bf   :  { %927 = vrot.lane.b32.xlu0 %v864_v19, %s3822_s23 }
 0x3c1   :  { %929 = vrot.lane.b32.xlu1 %v867_v0, %s3822_s23 }
 0x3c2   :  { %v3099_v56 = vpop.f32.mrb[44].mxu0 }
 0x3c3   :  { %1037 = vrot.lane.b32.xlu0 %v4346_v21, %s3821_s5  ;;  %v880_v61 = vpop.f32.mrb[45].mxu0 }
 0x3c4   :  { %v3100_v54 = vpop.f32.mrb[46].mxu0 }
 0x3c5   :  { %1039 = vrot.lane.b32.xlu1 %v4352_v28, %s3821_s5  ;;  %v883_v57 = vpop.f32.mrb[47].mxu0 }
 0x3c7   :  { %935 = vrot.lane.b32.xlu0 %v880_v61, %s3822_s23 }
 0x3c9   :  { %937 = vrot.lane.b32.xlu1 %v883_v57, %s3822_s23 }
 0x3cb   :  { %939 = vrot.lane.b32.xlu0 %v3099_v56, %s3822_s23 }
 0x3cd   :  { %941 = vrot.lane.b32.xlu1 %v3100_v54, %s3822_s23 }
 0x3cf   :  { %1041 = vrot.lane.b32.xlu0 %v4360_v36, %s3821_s5 }
 0x3d1   :  { %1043 = vrot.lane.b32.xlu1 %v4364_v39, %s3821_s5 }
 0x3d3   :  { %1045 = vrot.lane.b32.xlu0 %v4358_v31, %s3821_s5 }
 0x3d5   :  { %1047 = vrot.lane.b32.xlu1 %v4362_v38, %s3821_s5 }
 0x3d7   :  { %1049 = vrot.lane.b32.xlu0 %v4368_v46, %s3821_s5 }
 0x3d9   :  { %1051 = vrot.lane.b32.xlu1 %v4372_v53, %s3821_s5 }
 0x3db   :  { %1053 = vrot.lane.b32.xlu0 %v4366_v45, %s3821_s5 }
 0x3dd   :  { %1055 = vrot.lane.b32.xlu1 %v4370_v52, %s3821_s5 }
 0x3fd   :  { %v4412_v0 = vpop.permute.xlu0 %1029 }
 0x3ff   :  { %v1032_v60 = vpop.permute.xlu1 %1031 }
 0x401   :  { %v1026_v19 = vpop.permute.xlu0 %1025 }
 0x403   :  { %v1028_v6 = vpop.permute.xlu1 %1027 }
 0x406   :  { %v4414_v56 = vpop.permute.xlu0 %1033 }
 0x408   :  { %v4416_v61 = vpop.permute.xlu1 %1035 }
 0x41d   :  { %v916_v54 = vpop.permute.xlu0 %915 }
 0x41e   :  { %v961_v49 = vadd.f32 %v4330_v11, %v916_v54 }
 0x41f   :  { %v918_v57 = vpop.permute.xlu1 %917 }
 0x420   :  { %v962_v3 = vadd.f32 %v4336_v17, %v918_v57  ;;  %v979_v26 = vadd.f32 %v4419_v55, %v961_v49 }
 0x421   :  { %v912_v44 = vpop.permute.xlu0 %911 }
 0x422   :  { %v959_v40 = vadd.f32 %v912_v44, %v4334_v12  ;;  %v980_v47 = vadd.f32 %v4419_v55, %v962_v3 }
 0x423   :  { %v914_v48 = vpop.permute.xlu1 %913 }
 0x424   :  { %v977_v30 = vadd.f32 %v4419_v55, %v959_v40  ;;  %v960_v41 = vadd.f32 %v914_v48, %v4340_v22 }
 0x425   :  { %v924_v37 = vpop.permute.xlu0 %923 }
 0x426   :  { %3539 = vtanh.f32 %v977_v30  ;;  %v978_v57 = vadd.f32 %v4419_v55, %v960_v41  ;;  %v965_v54 = vadd.f32 %v4346_v21, %v924_v37 }
 0x427   :  { %3541 = vtanh.f32 %v980_v47  ;;  %v926_v33 = vpop.permute.xlu1 %925 }
 0x428   :  { %3543 = vtanh.f32 %v978_v57  ;;  %v966_v44 = vadd.f32 %v4352_v28, %v926_v33  ;;  %v983_v30 = vadd.f32 %v4419_v55, %v965_v54 }
 0x429   :  { %v920_v34 = vpop.permute.xlu0 %919  ;;  %3545 = vtanh.f32 %v979_v26 }
 0x42a   :  { %v963_v3 = vadd.f32 %v920_v34, %v4348_v23  ;;  %v984_v41 = vadd.f32 %v4419_v55, %v966_v44 }
 0x42b   :  { %v922_v40 = vpop.permute.xlu1 %921 }
 0x42c   :  { %v981_v48 = vadd.f32 %v4419_v55, %v963_v3  ;;  %v964_v7 = vadd.f32 %v922_v40, %v4354_v29 }
 0x42d   :  { %v932_v49 = vpop.permute.xlu0 %931 }
 0x42e   :  { %3547 = vtanh.f32 %v981_v48  ;;  %v982_v47 = vadd.f32 %v4419_v55, %v964_v7  ;;  %v969_v40 = vadd.f32 %v4358_v31, %v932_v49 }
 0x42f   :  { %v934_v37 = vpop.permute.xlu1 %933 }
 0x430   :  { %v3540_v57 = vpop.eup %3539  ;;  %3549 = vtanh.f32 %v982_v47  ;;  %v970_v47 = vadd.f32 %v4362_v38, %v934_v37 }
 0x431   :  { %v3542_v26 = vpop.eup %3541  ;;  %3551 = vtanh.f32 %v983_v30  ;;  %v928_v33 = vpop.permute.xlu0 %927  ;;  %v1073_v34 = vmul.f32 %v3540_v57, %v1026_v19 }
 0x432   :  { %v3544_v27 = vpop.eup %3543  ;;  %3553 = vtanh.f32 %v984_v41  ;;  %v967_v3 = vadd.f32 %v928_v33, %v4360_v36  ;;  %v1076_v30 = vmul.f32 %v3542_v26, %v1032_v60  ;;  %v987_v41 = vadd.f32 %v4419_v55, %v969_v40 }
 0x433   :  { %v930_v54 = vpop.permute.xlu1 %929  ;;  %1091 = vperm.xlu0 %3469, %v1073_v34   ;;  %v1074_v8 = vmul.f32 %v3544_v27, %v1028_v6  ;;  %v3546_v44 = vpop.eup %3545  ;;  %v988_v6 = vadd.f32 %v4419_v55, %v970_v47 }
 0x434   :  { %v985_v48 = vadd.f32 %v4419_v55, %v967_v3  ;;  %v968_v7 = vadd.f32 %v930_v54, %v4364_v39  ;;  %v1075_v49 = vmul.f32 %v3546_v44, %v4412_v0 }
 0x435   :  { %v1038_v9 = vpop.permute.xlu0 %1037  ;;  %1096 = vperm.xlu1 %3470, %v1074_v8  }
 0x436   :  { %3555 = vtanh.f32 %v985_v48  ;;  %v986_v19 = vadd.f32 %v4419_v55, %v968_v7 }
 0x437   :  { %v1040_v57 = vpop.permute.xlu1 %1039  ;;  %1106 = vperm.xlu0 %3469, %v1076_v30  }
 0x438   :  { %v3548_v27 = vpop.eup %3547  ;;  %3557 = vtanh.f32 %v986_v19 }
 0x439   :  { %v936_v33 = vpop.permute.xlu0 %935  ;;  %1101 = vperm.xlu1 %3470, %v1075_v49   ;;  %3559 = vtanh.f32 %v987_v41  ;;  %v1077_v3 = vmul.f32 %v3548_v27, %v4414_v56 }
 0x43a   :  { %v3550_v34 = vpop.eup %3549  ;;  %v971_v37 = vadd.f32 %v936_v33, %v4368_v46  ;;  %3561 = vtanh.f32 %v988_v6 }
 0x43b   :  { %v3552_v8 = vpop.eup %3551  ;;  %v938_v60 = vpop.permute.xlu1 %937  ;;  %v1078_v26 = vmul.f32 %v3550_v34, %v4416_v61 }
 0x43c   :  { %v3554_v40 = vpop.eup %3553  ;;  %v989_v54 = vadd.f32 %v4419_v55, %v971_v37  ;;  %v972_v0 = vadd.f32 %v938_v60, %v4372_v53  ;;  %v1079_v47 = vmul.f32 %v3552_v8, %v1038_v9 }
 0x43d   :  { %1116 = vperm.xlu0 %3469, %v1078_v26   ;;  %v940_v44 = vpop.permute.xlu0 %939  ;;  %1111 = vperm.xlu1 %3470, %v1077_v3   ;;  %v1080_v30 = vmul.f32 %v3554_v40, %v1040_v57 }
 0x43e   :  { %3563 = vtanh.f32 %v989_v54  ;;  %v990_v48 = vadd.f32 %v4419_v55, %v972_v0  ;;  %v973_v7 = vadd.f32 %v4366_v45, %v940_v44 }
 0x43f   :  { %v942_v19 = vpop.permute.xlu1 %941 }
 0x440   :  { %v3556_v61 = vpop.eup %3555  ;;  %3565 = vtanh.f32 %v990_v48  ;;  %v991_v56 = vadd.f32 %v4419_v55, %v973_v7  ;;  %v974_v41 = vadd.f32 %v4370_v52, %v942_v19 }
 0x441   :  { %1126 = vperm.xlu0 %3469, %v1080_v30   ;;  %v1042_v49 = vpop.permute.xlu0 %1041  ;;  %1121 = vperm.xlu1 %3470, %v1079_v47  }
 0x442   :  { %v3558_v27 = vpop.eup %3557  ;;  %3567 = vtanh.f32 %v991_v56  ;;  %v992_v6 = vadd.f32 %v4419_v55, %v974_v41  ;;  %v1081_v33 = vmul.f32 %v3556_v61, %v1042_v49  ;;  %v4455_v41 = vld [vmem:[#allocation7] sm:$0xff]   ;;  %v5027_v49 = vpack.i.bf16 %v3972_v16, %v3967_v15  ;;  %v3670_v15 = vld [vmem:[%s4969_s6 + $0x18] sm:$0xff] }
 0x443   :  { %v1044_v34 = vpop.permute.xlu1 %1043  ;;  %v3560_v9 = vpop.eup %3559  ;;  %3117 = vmatprep.mubr.bf16.mxu1 %v4455_v41 }
 0x444   :  { %3569 = vtanh.f32 %v992_v6  ;;  %v1082_v37 = vmul.f32 %v3558_v27, %v1044_v34  ;;  %v3562_v60 = vpop.eup %3561  ;;  %v3667_v27 = vld [vmem:[%s4969_s6 + $0x20] sm:$0xff]  ;;  %v3668_v6 = vld [vmem:[%s4969_s6 + $0x28] sm:$0xff]  ;;  %v3825_v34 = vmov 0  }
 0x445   :  { %v1046_v57 = vpop.permute.xlu0 %1045  ;;  %1131 = vperm.xlu1 %3470, %v1081_v33   ;;  %v3481_v33 = vpack.i.bf16 %v3668_v6, %v3667_v27 }
 0x446   :  { %v1083_v8 = vmul.f32 %v3560_v9, %v1046_v57  ;;  %1136 = vperm.xlu0 %3469, %v1082_v37   ;;  %v3669_v37 = vld [vmem:[%s4969_s6 + $0x10] sm:$0xff]  ;;  %v3671_v9 = vld [vmem:[%s4969_s6 + $0x40] sm:$0xff]  ;;  %v3672_v57 = vld [vmem:[%s4969_s6 + $0x48] sm:$0xff] }
 0x447   :  { %v1048_v26 = vpop.permute.xlu1 %1047  ;;  %v3476_v16 = vpack.i.bf16 %v3670_v15, %v3669_v37  ;;  %v3532_v15 = vld [vmem:[#allocation7 + $0x8] sm:$0xff]  }
 0x448   :  { %v3564_v3 = vpop.eup %3563  ;;  %v1084_v40 = vmul.f32 %v3562_v60, %v1048_v26  ;;  %v3673_v60 = vld [vmem:[%s4969_s6 + $0x30] sm:$0xff]  ;;  %v3674_v26 = vld [vmem:[%s4969_s6 + $0x38] sm:$0xff] }
 0x449   :  { %v1050_v54 = vpop.permute.xlu0 %1049  ;;  %1141 = vperm.xlu1 %3470, %v1083_v8   ;;  %v3491_v8 = vpack.i.bf16 %v3672_v57, %v3671_v9 }
 0x44a   :  { %v3566_v0 = vpop.eup %3565  ;;  %v1085_v44 = vmul.f32 %v3564_v3, %v1050_v54  ;;  %1146 = vperm.xlu0 %3469, %v1084_v40   ;;  %v3486_v3 = vpack.i.bf16 %v3674_v26, %v3673_v60  ;;  %v3675_v40 = vld [vmem:[%s4969_s6 + $0x50] sm:$0xff]  ;;  %v3676_v54 = vld [vmem:[%s4969_s6 + $0x58] sm:$0xff] }
 0x44b   :  { %v1052_v48 = vpop.permute.xlu1 %1051  ;;  %v3537_v26 = vld [vmem:[#allocation7 + $0x30] sm:$0xff]  }
 0x44c   :  { %v3568_v55 = vpop.eup %3567  ;;  %v1086_v7 = vmul.f32 %v3566_v0, %v1052_v48  ;;  %v3496_v0 = vpack.i.bf16 %v3676_v54, %v3675_v40  ;;  %v3678_v48 = vld [vmem:[%s4969_s6 + $0x68] sm:$0xff] }
 0x44d   :  { %v1054_v47 = vpop.permute.xlu0 %1053  ;;  %1151 = vperm.xlu1 %3470, %v1085_v44   ;;  %v3677_v44 = vld [vmem:[%s4969_s6 + $0x60] sm:$0xff]  ;;  %s2731_s6 = sld [smem:[#allocation9 + $0x1]] }
 0x44e   :  { %v3570_v30 = vpop.eup %3569  ;;  %v1087_v19 = vmul.f32 %v3568_v55, %v1054_v47  ;;  %1156 = vperm.xlu0 %3469, %v1086_v7   ;;  %v3503_v55 = vpack.i.bf16 %v3678_v48, %v3677_v44 }
 0x44f   :  { %v1056_v61 = vpop.permute.xlu1 %1055 }
 0x450   :  { %v1088_v56 = vmul.f32 %v3570_v30, %v1056_v61 }
 0x451   :  { %1161 = vperm.xlu1 %3470, %v1087_v19  }
 0x452   :  { %1166 = vperm.xlu0 %3469, %v1088_v56  }
 0x455   :  { %3472 = vrot.lane.b32.xlu1 %v5027_v49, %s3824_s25 }
 0x456   :  { %3501 = vset.pattern.permute.xlu1 %v3825_v34  ;;  %3502 = vset.pattern.permute.xlu0 %v3825_v34 }
 0x457   :  { %3477 = vrot.lane.b32.xlu0 %v3476_v16, %s3824_s25  ;;  %v3533_v16 = vld [vmem:[#allocation7 + $0x10] sm:$0xff]  }
 0x459   :  { %3482 = vrot.lane.b32.xlu1 %v3481_v33, %s3824_s25 }
 0x45b   :  { %3487 = vrot.lane.b32.xlu0 %v3486_v3, %s3824_s25 }
 0x45d   :  { %3492 = vrot.lane.b32.xlu1 %v3491_v8, %s3824_s25  ;;  %v3535_v8 = vld [vmem:[#allocation7 + $0x20] sm:$0xff]  }
 0x45f   :  { %3497 = vrot.lane.b32.xlu0 %v3496_v0, %s3824_s25 }
 0x461   :  { %1340 = vperm.xlu1 %3501, %v4092_v1   ;;  %v3508_v1 = vpack.i.bf16 %v4085_v63, %v4080_v62  ;;  %v5028_v62 = vmov 33  }
 0x463   :  { %1345 = vperm.xlu0 %3502, %v4097_v2  }
 0x465   :  { %3504 = vrot.lane.b32.xlu1 %v3503_v55, %s3824_s25 }
 0x467   :  { %1355 = vperm.xlu0 %3502, %v4195_v5  }
 0x469   :  { %1350 = vperm.xlu1 %3501, %v4190_v4  }
 0x46b   :  { %1360 = vperm.xlu0 %3502, %v4211_v13  }
 0x46d   :  { %3509 = vrot.lane.b32.xlu1 %v3508_v1, %s3824_s25 }
 0x46f   :  { %1370 = vperm.xlu0 %3502, %v4224_v24  }
 0x471   :  { %1365 = vperm.xlu1 %3501, %v4216_v14  }
 0x473   :  { %1380 = vperm.xlu0 %3502, %v4238_v32  }
 0x475   :  { %1375 = vperm.xlu1 %3501, %v4229_v25  }
 0x477   :  { %1390 = vperm.xlu0 %3502, %v4252_v42  }
 0x479   :  { %1385 = vperm.xlu1 %3501, %v4243_v35  }
 0x47b   :  { %1400 = vperm.xlu0 %3502, %v4266_v50  }
 0x47d   :  { %1395 = vperm.xlu1 %3501, %v4257_v43  }
 0x47f   :  { %1410 = vperm.xlu0 %3502, %v4280_v58  }
 0x481   :  { %1405 = vperm.xlu1 %3501, %v4271_v51  }
 0x483   :  { %3513 = vset.pattern.permute.xlu0 %v5028_v62 }
 0x485   :  { %1415 = vperm.xlu1 %3501, %v4285_v59  }
 0x489   :  { %3514 = vset.pattern.permute.xlu1 %v5028_v62 }
 0x4b2   :  { %v1092_v63 = vpop.permute.xlu0 %1091 }
 0x4b3   :  { %v1169_v4 = vmul.f32 %v1092_v63, %v4334_v12 }
 0x4b4   :  { %v1097_v2 = vpop.permute.xlu1 %1096 }
 0x4b5   :  { %v1170_v5 = vmul.f32 %v1097_v2, %v4340_v22 }
 0x4b6   :  { %v1107_v13 = vpop.permute.xlu0 %1106 }
 0x4b7   :  { %v1185_v14 = vpack.c.bf16 %v1170_v5, %v1169_v4  ;;  %v1172_v25 = vmul.f32 %v4336_v17, %v1107_v13  ;;  %v3538_v4 = vld [vmem:[#allocation7 + $0x38] sm:$0xff]  }
 0x4b8   :  { %v1102_v24 = vpop.permute.xlu1 %1101 }
 0x4b9   :  { %v1171_v32 = vmul.f32 %v4330_v11, %v1102_v24  ;;  %3101 = vmatprep.subr.bf16.mxu1 %v1185_v14 }
 0x4ba   :  { %3102 = vmatpush3.bf16.msra.mxu1 %v1185_v14 }
 0x4bb   :  { %v1186_v35 = vpack.c.bf16 %v1172_v25, %v1171_v32 }
 0x4bc   :  { %v1117_v42 = vpop.permute.xlu0 %1116  ;;  %v1112_v43 = vpop.permute.xlu1 %1111 }
 0x4bd   :  { %v1174_v50 = vmul.f32 %v1117_v42, %v4354_v29  ;;  %v1173_v51 = vmul.f32 %v1112_v43, %v4348_v23  ;;  %3103 = vmatprep.subr.bf16.mxu1 %v1186_v35 }
 0x4be   :  { %3104 = vmatpush3.bf16.msra.mxu1 %v1186_v35 }
 0x4bf   :  { %v1187_v58 = vpack.c.bf16 %v1174_v50, %v1173_v51 }
 0x4c0   :  { %v1127_v59 = vpop.permute.xlu0 %1126  ;;  %v1122_v12 = vpop.permute.xlu1 %1121 }
 0x4c1   :  { %v1176_v22 = vmul.f32 %v4352_v28, %v1127_v59  ;;  %v1175_v17 = vmul.f32 %v4346_v21, %v1122_v12  ;;  %3105 = vmatprep.subr.bf16.mxu1 %v1187_v58 }
 0x4c2   :  { %3106 = vmatpush3.bf16.msra.mxu1 %v1187_v58 }
 0x4c3   :  { %v1188_v11 = vpack.c.bf16 %v1176_v22, %v1175_v17 }
 0x4c4   :  { %v1132_v7 = vpop.permute.xlu1 %1131 }
 0x4c5   :  { %v1177_v47 = vmul.f32 %v1132_v7, %v4360_v36  ;;  %v1137_v30 = vpop.permute.xlu0 %1136  ;;  %3107 = vmatprep.subr.bf16.mxu1 %v1188_v11 }
 0x4c6   :  { %v1178_v29 = vmul.f32 %v1137_v30, %v4364_v39  ;;  %3108 = vmatpush3.bf16.msra.mxu1 %v1188_v11 }
 0x4c8   :  { %v1189_v23 = vpack.c.bf16 %v1178_v29, %v1177_v47  ;;  %v1142_v19 = vpop.permute.xlu1 %1141 }
 0x4c9   :  { %v1179_v61 = vmul.f32 %v4358_v31, %v1142_v19  ;;  %v1147_v56 = vpop.permute.xlu0 %1146 }
 0x4ca   :  { %v1180_v28 = vmul.f32 %v4362_v38, %v1147_v56  ;;  %3109 = vmatprep.subr.bf16.mxu1 %v1189_v23 }
 0x4cb   :  { %3110 = vmatpush3.bf16.msra.mxu1 %v1189_v23 }
 0x4cc   :  { %v1190_v21 = vpack.c.bf16 %v1180_v28, %v1179_v61  ;;  %v1152_v49 = vpop.permute.xlu1 %1151 }
 0x4cd   :  { %v1181_v27 = vmul.f32 %v1152_v49, %v4368_v46  ;;  %v1157_v6 = vpop.permute.xlu0 %1156 }
 0x4ce   :  { %v1182_v36 = vmul.f32 %v1157_v6, %v4372_v53  ;;  %3111 = vmatprep.subr.bf16.mxu1 %v1190_v21  ;;  %v3534_v53 = vld [vmem:[#allocation7 + $0x18] sm:$0xff]  }
 0x4cf   :  { %3112 = vmatpush3.bf16.msra.mxu1 %v1190_v21 }
 0x4d0   :  { %v1191_v39 = vpack.c.bf16 %v1182_v36, %v1181_v27  ;;  %v1162_v33 = vpop.permute.xlu1 %1161  ;;  %v4560_v27 = vmul.f32 0.3, %v4111_v10  ;;  %v4563_v36 = vmul.f32 0.3, %v4121_v20 }
 0x4d1   :  { %v1183_v34 = vmul.f32 %v4366_v45, %v1162_v33  ;;  %v1167_v37 = vpop.permute.xlu0 %1166  ;;  %v3536_v45 = vld [vmem:[#allocation7 + $0x28] sm:$0xff]   ;;  %v4567_v33 = vmul.f32 0.3, %v4118_v18 }
 0x4d2   :  { %v1184_v31 = vmul.f32 %v4370_v52, %v1167_v37  ;;  %3113 = vmatprep.subr.bf16.mxu1 %v1191_v39 }
 0x4d3   :  { %3114 = vmatpush3.bf16.msra.mxu1 %v1191_v39 }
 0x4d4   :  { %v1192_v38 = vpack.c.bf16 %v1184_v31, %v1183_v34  ;;  %v3473_v46 = vpop.permute.xlu1 %3472 }
 0x4d5   :  { %v3475_v9 = vunpack.i.h.bf16 %v3473_v46  ;;  %v3474_v57 = vunpack.i.l.bf16 %v3473_v46  ;;  %v3478_v54 = vpop.permute.xlu0 %3477 }
 0x4d6   :  { %3115 = vmatprep.subr.bf16.mxu1 %v1192_v38  ;;  %v3480_v0 = vunpack.i.h.bf16 %v3478_v54  ;;  %v3479_v44 = vunpack.i.l.bf16 %v3478_v54  ;;  %v5032_v54 = vld [vmem:[#allocation30_spill] sm:$0xff] }
 0x4d7   :  { %3116 = vmatpush3.bf16.msra.mxu1 %v1192_v38  ;;  %v3389_v60 = vpack.c.bf16 %v3475_v9, %v3474_v57  ;;  %v5029_v38 = vld [vmem:[#allocation17_spill] sm:$0xff] }
 0x4d8   :  { %v3483_v52 = vpop.permute.xlu1 %3482  ;;  %v3393_v48 = vpack.c.bf16 %v3480_v0, %v3479_v44  ;;  %v5033_v0 = vld [vmem:[#allocation21_spill] sm:$0xff] }
 0x4d9   :  { %3390 = vmatprep.subr.bf16.mxu1 %v3389_v60  ;;  %v3485_v3 = vunpack.i.h.bf16 %v3483_v52  ;;  %v3484_v40 = vunpack.i.l.bf16 %v3483_v52  ;;  %v3488_v1 = vpop.permute.xlu0 %3487  ;;  %v4591_v44 = vmul.f32 0.3, %v5033_v0  ;;  %v5047_v0 = vld [vmem:[#allocation35_spill] sm:$0xff] }
 0x4da   :  { %3118 = vmatmul.mubr.bf16.vlgmr.msra.gmra.mrb[16].mxu1 %v3532_v15  ;;  %v3490_v62 = vunpack.i.h.bf16 %v3488_v1  ;;  %v3489_v63 = vunpack.i.l.bf16 %v3488_v1  ;;  %v4572_v15 = vmul.f32 0.3, %v5029_v38 }
 0x4db   :  { %3121 = vmatprep.mubr.bf16.mxu1 %v3533_v16  ;;  %3392 = vmatpush3.bf16.msra.mxu1 %v3389_v60  ;;  %v3397_v55 = vpack.c.bf16 %v3485_v3, %v3484_v40 }
 0x4dc   :  { %3394 = vmatprep.subr.bf16.mxu1 %v3393_v48  ;;  %v3493_v2 = vpop.permute.xlu1 %3492  ;;  %v3401_v14 = vpack.c.bf16 %v3490_v62, %v3489_v63 }
 0x4dd   :  { %v3495_v5 = vunpack.i.h.bf16 %v3493_v2  ;;  %v3494_v13 = vunpack.i.l.bf16 %v3493_v2  ;;  %v3498_v24 = vpop.permute.xlu0 %3497 }
 0x4de   :  { %v3500_v25 = vunpack.i.h.bf16 %v3498_v24  ;;  %v3499_v32 = vunpack.i.l.bf16 %v3498_v24 }
 0x4df   :  { %3396 = vmatpush3.bf16.msra.mxu1 %v3393_v48  ;;  %v3405_v35 = vpack.c.bf16 %v3495_v5, %v3494_v13  ;;  %v5035_v5 = vld [vmem:[#allocation18_spill] sm:$0xff] }
 0x4e0   :  { %3398 = vmatprep.subr.bf16.mxu1 %v3397_v55  ;;  %v3409_v42 = vpack.c.bf16 %v3500_v25, %v3499_v32  ;;  %v4541_v43 = vpop.permute.xlu1 %1340  ;;  %v4602_v13 = vmul.f32 0.3, %v5035_v5  ;;  %v5051_v5 = vld [vmem:[#allocation29_spill] sm:$0xff] }
 0x4e2   :  { %3122 = vmatmul.mubr.bf16.gmra.mrb[20].mxu1 %v3534_v53  ;;  %v4545_v47 = vpop.permute.xlu0 %1345 }
 0x4e3   :  { %3125 = vmatprep.mubr.bf16.mxu1 %v3535_v8  ;;  %3400 = vmatpush3.bf16.msra.mxu1 %v3397_v55  ;;  %v5034_v55 = vld [vmem:[#allocation20_spill] sm:$0xff] }
 0x4e4   :  { %3402 = vmatprep.subr.bf16.mxu1 %v3401_v14  ;;  %v3505_v50 = vpop.permute.xlu1 %3504  ;;  %v4595_v1 = vmul.f32 0.3, %v5034_v55  ;;  %v5048_v55 = vld [vmem:[#allocation27_spill] sm:$0xff] }
 0x4e5   :  { %v3507_v51 = vunpack.i.h.bf16 %v3505_v50  ;;  %v3506_v58 = vunpack.i.l.bf16 %v3505_v50 }
 0x4e6   :  { %v4547_v30 = vpop.permute.xlu0 %1355 }
 0x4e7   :  { %3404 = vmatpush3.bf16.msra.mxu1 %v3401_v14  ;;  %v3413_v59 = vpack.c.bf16 %v3507_v51, %v3506_v58 }
 0x4e8   :  { %3406 = vmatprep.subr.bf16.mxu1 %v3405_v35  ;;  %v4543_v12 = vpop.permute.xlu1 %1350 }
 0x4ea   :  { %3126 = vmatmul.mubr.bf16.gmra.mrb[24].mxu1 %v3536_v45  ;;  %v4549_v29 = vpop.permute.xlu0 %1360  ;;  %v5030_v45 = vld [vmem:[#allocation31_spill] sm:$0xff] }
 0x4eb   :  { %3129 = vmatprep.mubr.bf16.mxu1 %v3537_v26  ;;  %3408 = vmatpush3.bf16.msra.mxu1 %v3405_v35  ;;  %v5031_v26 = vld [vmem:[#allocation19_spill] sm:$0xff] }
 0x4ec   :  { %3410 = vmatprep.subr.bf16.mxu1 %v3409_v42  ;;  %v3510_v22 = vpop.permute.xlu1 %3509  ;;  %v4586_v3 = vmul.f32 0.3, %v5031_v26 }
 0x4ed   :  { %v3512_v17 = vunpack.i.h.bf16 %v3510_v22  ;;  %v3511_v11 = vunpack.i.l.bf16 %v3510_v22  ;;  %v5037_v22 = vld [vmem:[#allocation33_spill] sm:$0xff] }
 0x4ee   :  { %v4553_v19 = vpop.permute.xlu0 %1370 }
 0x4ef   :  { %3412 = vmatpush3.bf16.msra.mxu1 %v3409_v42  ;;  %v3417_v7 = vpack.c.bf16 %v3512_v17, %v3511_v11  ;;  %v5038_v11 = vld [vmem:[#allocation23_spill] sm:$0xff] }
 0x4f0   :  { %3414 = vmatprep.subr.bf16.mxu1 %v3413_v59  ;;  %v4551_v23 = vpop.permute.xlu1 %1365 }
 0x4f2   :  { %3130 = vmatmul.mubr.bf16.gmra.mrb[28].mxu1 %v3538_v4  ;;  %v4576_v46 = vpop.permute.xlu0 %1380 }
 0x4f3   :  { %3416 = vmatpush3.bf16.msra.mxu1 %v3413_v59 }
 0x4f4   :  { %3418 = vmatprep.subr.bf16.mxu1 %v3417_v7  ;;  %v4556_v21 = vpop.permute.xlu1 %1375 }
 0x4f6   :  { %v4597_v63 = vpop.permute.xlu0 %1390 }
 0x4f7   :  { %3420 = vmatpush3.bf16.msra.mxu1 %v3417_v7  ;;  %v4616_v7 = vmul.f32 0.3, %v5038_v11 }
 0x4f8   :  { %v4579_v18 = vpop.permute.xlu1 %1385 }
 0x4fa   :  { %v4610_v59 = vpop.permute.xlu0 %1400 }
 0x4fb   :  { %5036 = vst [vmem:[#allocation17_spill] sm:$0xff] %v4610_v59 }
 0x4fc   :  { %v4606_v25 = vpop.permute.xlu1 %1395 }
 0x5ad   :  { %v3119_v61 = vpop.f32.mrb[16].mxu1 }
 0x5ae   :  { %v1420_v56 = vmul.f32 %v3119_v61, %v4543_v12  ;;  %v1275_v28 = vpop.f32.mrb[17].mxu1 }
 0x5af   :  { %v1418_v49 = vmul.f32 %v4541_v43, %v1275_v28  ;;  %v3120_v6 = vpop.f32.mrb[18].mxu1  ;;  %v5040_v28 = vld [vmem:[#allocation25_spill] sm:$0xff] }
 0x5b0   :  { %v1421_v39 = vmul.f32 %v3120_v6, %v4547_v30  ;;  %v1278_v34 = vpop.f32.mrb[19].mxu1  ;;  %v1452_v10 = vadd.f32 %v4563_v36, %v1420_v56  ;;  %v5039_v56 = vld [vmem:[#allocation32_spill] sm:$0xff] }
 0x5b1   :  { %v1450_v37 = vadd.f32 %v4560_v27, %v1418_v49  ;;  %v1419_v31 = vmul.f32 %v4545_v47, %v1278_v34  ;;  %v4621_v49 = vmul.f32 0.3, %v5040_v28 }
 0x5b2   :  { %v1453_v16 = vadd.f32 %v4567_v33, %v1421_v39  ;;  %v5041_v39 = vld [vmem:[#allocation24_spill] sm:$0xff] }
 0x5b3   :  { %v1451_v20 = vadd.f32 %v4572_v15, %v1419_v31  ;;  %3165 = vmatprep.mubr.f32.mxu1 %v1450_v37  ;;  %v4625_v34 = vmul.f32 0.3, %v5041_v39  ;;  %v4627_v31 = vpop.permute.xlu1 %1405  ;;  %v5058_v39 = vld [vmem:[#allocation36_spill] sm:$0xff] }
 0x5b4   :  { %v1676_v53 = vpack.c.bf16 %v1453_v16, %v1452_v10  ;;  %5043 = vst [vmem:[#allocation19_spill] sm:$0xff] %v4627_v31 }
 0x5b5   :  { %v1675_v9 = vpack.c.bf16 %v1451_v20, %v1450_v37  ;;  %v3123_v57 = vpop.f32.mrb[20].mxu1  ;;  %3166 = vmatmul.mubr.f32.vlgmr.msra.gmra.mrb[32].mxu1 %v1451_v20  ;;  %5042 = vst [vmem:[#allocation31_spill] sm:$0xff] %v4625_v34 }
 0x5b6   :  { %1684 = vst [vmem:[#allocation2 + $0x8] sm:$0xff] %v1676_v53  ;;  %v1424_v8 = vmul.f32 %v3123_v57, %v4553_v19  ;;  %v1291_v60 = vpop.f32.mrb[21].mxu1  ;;  %3168 = vmatprep.mubr.f32.mxu1 %v1452_v10 }
 0x5b7   :  { %1692 = vst.msk [vmem:[#allocation2 + $0x8] sm:$0xff] %vm572_vm0, %v5030_v45  ;;  %1683 = vst [vmem:[#allocation2] sm:$0xff] %v1675_v9  ;;  %v1422_v52 = vmul.f32 %v4549_v29, %v1291_v60  ;;  %v3124_v40 = vpop.f32.mrb[22].mxu1  ;;  %v4637_v60 = vpop.permute.xlu0 %1410 }
 0x5b8   :  { %1691 = vst.msk [vmem:[#allocation2] sm:$0xff] %vm572_vm0, %v5032_v54  ;;  %v1425_v48 = vmul.f32 %v3124_v40, %v4556_v21  ;;  %v1294_v62 = vpop.f32.mrb[23].mxu1  ;;  %v1456_v14 = vadd.f32 %v4591_v44, %v1424_v8  ;;  %5045 = vst [vmem:[#allocation30_spill] sm:$0xff] %v4637_v60  ;;  %v4640_v54 = vpop.permute.xlu1 %1415 }
 0x5b9   :  { %v1454_v2 = vadd.f32 %v4586_v3, %v1422_v52  ;;  %v1423_v4 = vmul.f32 %v4551_v23, %v1294_v62  ;;  %3169 = vmatmul.mubr.f32.gmra.mrb[34].mxu1 %v1453_v16  ;;  %v5044_v16 = vld [vmem:[#allocation22_spill] sm:$0xff]  ;;  %5046 = vst [vmem:[#allocation21_spill] sm:$0xff] %v4640_v54  ;;  %v4646_v62 = vmul.f32 0.3, %v5048_v55 }
 0x5ba   :  { %v1457_v24 = vadd.f32 %v4595_v1, %v1425_v48  ;;  %v4632_v20 = vmul.f32 0.3, %v5044_v16 }
 0x5bb   :  { %v1455_v32 = vadd.f32 %v4602_v13, %v1423_v4  ;;  %3171 = vmatprep.mubr.f32.mxu1 %v1454_v2  ;;  %5049 = vst [vmem:[#allocation20_spill] sm:$0xff] %v4646_v62  ;;  %v5050_v4 = vld [vmem:[#allocation34_spill] sm:$0xff] }
 0x5bc   :  { %v1678_v35 = vpack.c.bf16 %v1457_v24, %v1456_v14 }
 0x5bd   :  { %v1677_v42 = vpack.c.bf16 %v1455_v32, %v1454_v2  ;;  %v3127_v50 = vpop.f32.mrb[24].mxu1  ;;  %3172 = vmatmul.mubr.f32.gmra.mrb[36].mxu1 %v1455_v32  ;;  %v5053_v32 = vld [vmem:[#allocation28_spill] sm:$0xff] }
 0x5be   :  { %1686 = vst [vmem:[#allocation2 + $0x18] sm:$0xff] %v1678_v35  ;;  %v1428_v51 = vmul.f32 %v3127_v50, %v4597_v63  ;;  %v1307_v58 = vpop.f32.mrb[25].mxu1  ;;  %3174 = vmatprep.mubr.f32.mxu1 %v1456_v14  ;;  %v4651_v14 = vmul.f32 0.3, %v5051_v5  ;;  %v4655_v35 = vmul.f32 0.3, %v5053_v32 }
 0x5bf   :  { %1685 = vst [vmem:[#allocation2 + $0x10] sm:$0xff] %v1677_v42  ;;  %1694 = vst.msk [vmem:[#allocation2 + $0x18] sm:$0xff] %vm572_vm0, %v5037_v22  ;;  %v1426_v17 = vmul.f32 %v4576_v46, %v1307_v58  ;;  %v3128_v61 = vpop.f32.mrb[26].mxu1  ;;  %v5055_v58 = vld [vmem:[#allocation26_spill] sm:$0xff] }
 0x5c0   :  { %1693 = vst.msk [vmem:[#allocation2 + $0x10] sm:$0xff] %vm572_vm0, %v5039_v56  ;;  %v1429_v6 = vmul.f32 %v3128_v61, %v4606_v25  ;;  %v1310_v37 = vpop.f32.mrb[27].mxu1  ;;  %v1460_v53 = vadd.f32 %v4621_v49, %v1428_v51  ;;  %5052 = vst [vmem:[#allocation18_spill] sm:$0xff] %v4651_v14  ;;  %v4660_v22 = vmul.f32 0.3, %v5055_v58 }
 0x5c1   :  { %v1458_v38 = vadd.f32 %v4616_v7, %v1426_v17  ;;  %v1427_v10 = vmul.f32 %v4579_v18, %v1310_v37  ;;  %3175 = vmatmul.mubr.f32.gmra.mrb[38].mxu1 %v1457_v24  ;;  %5054 = vst [vmem:[#allocation33_spill] sm:$0xff] %v4655_v35 }
 0x5c2   :  { %v1461_v9 = vadd.f32 %v4625_v34, %v1429_v6  ;;  %5056 = vst [vmem:[#allocation23_spill] sm:$0xff] %v4660_v22  ;;  %v5057_v6 = vld [vmem:[#allocation37_spill] sm:$0xff] }
 0x5c3   :  { %v1459_v57 = vadd.f32 %v4632_v20, %v1427_v10  ;;  %3177 = vmatprep.mubr.f32.mxu1 %v1458_v38 }
 0x5c4   :  { %v1680_v8 = vpack.c.bf16 %v1461_v9, %v1460_v53 }
 0x5c5   :  { %v1679_v45 = vpack.c.bf16 %v1459_v57, %v1458_v38  ;;  %v3131_v52 = vpop.f32.mrb[28].mxu1  ;;  %3178 = vmatmul.mubr.f32.gmra.mrb[40].mxu1 %v1459_v57 }
 0x5c6   :  { %1688 = vst [vmem:[#allocation2 + $0x28] sm:$0xff] %v1680_v8  ;;  %v1432_v26 = vmul.f32 %v3131_v52, %v4637_v60  ;;  %v1323_v40 = vpop.f32.mrb[29].mxu1  ;;  %3180 = vmatprep.mubr.f32.mxu1 %v1460_v53 }
 0x5c7   :  { %1687 = vst [vmem:[#allocation2 + $0x20] sm:$0xff] %v1679_v45  ;;  %1696 = vst.msk [vmem:[#allocation2 + $0x28] sm:$0xff] %vm572_vm0, %v5047_v0  ;;  %v1430_v48 = vmul.f32 %v4610_v59, %v1323_v40  ;;  %v3132_v2 = vpop.f32.mrb[30].mxu1 }
 0x5c8   :  { %1695 = vst.msk [vmem:[#allocation2 + $0x20] sm:$0xff] %vm572_vm0, %v5050_v4  ;;  %v1433_v24 = vmul.f32 %v3132_v2, %v4640_v54  ;;  %v1326_v42 = vpop.f32.mrb[31].mxu1  ;;  %v1464_v17 = vadd.f32 %v4651_v14, %v1432_v26 }
 0x5c9   :  { %v1462_v50 = vadd.f32 %v4646_v62, %v1430_v48  ;;  %v1431_v51 = vmul.f32 %v4627_v31, %v1326_v42  ;;  %3181 = vmatmul.mubr.f32.gmra.mrb[42].mxu1 %v1461_v9 }
 0x5ca   :  { %v1465_v11 = vadd.f32 %v4655_v35, %v1433_v24 }
 0x5cb   :  { %v1463_v61 = vadd.f32 %v4660_v22, %v1431_v51  ;;  %3183 = vmatprep.mubr.f32.mxu1 %v1462_v50 }
 0x5cc   :  { %v1682_v56 = vpack.c.bf16 %v1465_v11, %v1464_v17 }
 0x5cd   :  { %v1681_v28 = vpack.c.bf16 %v1463_v61, %v1462_v50  ;;  %3184 = vmatmul.mubr.f32.gmra.mrb[44].mxu1 %v1463_v61 }
 0x5ce   :  { %1690 = vst [vmem:[#allocation2 + $0x38] sm:$0xff] %v1682_v56  ;;  %3186 = vmatprep.mubr.f32.mxu1 %v1464_v17 }
 0x5cf   :  { %1689 = vst [vmem:[#allocation2 + $0x30] sm:$0xff] %v1681_v28  ;;  %1698 = vst.msk [vmem:[#allocation2 + $0x38] sm:$0xff] %vm572_vm0, %v5057_v6 }
 0x5d0   :  { %1697 = vst.msk [vmem:[#allocation2 + $0x30] sm:$0xff] %vm572_vm0, %v5058_v39 }
 0x5d1   :  { %3187 = vmatmul.mubr.f32.gmra.mrb[46].mxu1 %v1465_v11 }
 0x5d2   :  { %3253 = vmatprep.mubr.bf16.mxu1 %v4455_v41 }
 0x688   :  { %v3167_v37 = vpop.f32.mrb[32].mxu1 }
 0x689   :  { %v1596_v38 = vpop.f32.mrb[33].mxu1 }
 0x68a   :  { %v1699_v10 = vpack.c.bf16 %v3167_v37, %v1596_v38 }
 0x68c   :  { %1715 = vrot.lane.b32.xlu0 %v1699_v10, %s3820_s26  ;;  %v3170_v16 = vpop.f32.mrb[34].mxu1 }
 0x68d   :  { %v1606_v53 = vpop.f32.mrb[35].mxu1 }
 0x68e   :  { %v1700_v9 = vpack.c.bf16 %v3170_v16, %v1606_v53 }
 0x690   :  { %1717 = vrot.lane.b32.xlu1 %v1700_v9, %s3820_s26  ;;  %v3173_v57 = vpop.f32.mrb[36].mxu1 }
 0x691   :  { %v1616_v8 = vpop.f32.mrb[37].mxu1 }
 0x692   :  { %v1701_v45 = vpack.c.bf16 %v3173_v57, %v1616_v8 }
 0x694   :  { %1719 = vrot.lane.b32.xlu0 %v1701_v45, %s3820_s26  ;;  %v3176_v52 = vpop.f32.mrb[38].mxu1  ;;  %v3679_v45 = vld [vmem:[#allocation3 + $0x8] sm:$0xff]  }
 0x695   :  { %v1626_v26 = vpop.f32.mrb[39].mxu1 }
 0x696   :  { %v1702_v40 = vpack.c.bf16 %v3176_v52, %v1626_v26  ;;  %v3680_v52 = vld [vmem:[#allocation3 + $0x10] sm:$0xff]   ;;  %v3681_v26 = vld [vmem:[#allocation3 + $0x18] sm:$0xff]  }
 0x698   :  { %1721 = vrot.lane.b32.xlu1 %v1702_v40, %s3820_s26  ;;  %v3179_v41 = vpop.f32.mrb[40].mxu1  ;;  %v3682_v40 = vld [vmem:[#allocation3 + $0x20] sm:$0xff]  }
 0x699   :  { %v1636_v0 = vpop.f32.mrb[41].mxu1 }
 0x69a   :  { %v1703_v48 = vpack.c.bf16 %v3179_v41, %v1636_v0  ;;  %v3683_v41 = vld [vmem:[#allocation3 + $0x28] sm:$0xff]   ;;  %v3684_v0 = vld [vmem:[#allocation3 + $0x30] sm:$0xff]  }
 0x69c   :  { %1723 = vrot.lane.b32.xlu0 %v1703_v48, %s3820_s26  ;;  %v3182_v55 = vpop.f32.mrb[42].mxu1  ;;  %v3685_v48 = vld [vmem:[#allocation3 + $0x38] sm:$0xff]  }
 0x69d   :  { %v1646_v2 = vpop.f32.mrb[43].mxu1 }
 0x69e   :  { %v1704_v4 = vpack.c.bf16 %v3182_v55, %v1646_v2  ;;  %v3686_v55 = vld [vmem:[#allocation3 + $0x40] sm:$0xff]   ;;  %v3687_v2 = vld [vmem:[#allocation3 + $0x48] sm:$0xff]  }
 0x6a0   :  { %1725 = vrot.lane.b32.xlu1 %v1704_v4, %s3820_s26  ;;  %v3185_v5 = vpop.f32.mrb[44].mxu1  ;;  %v3688_v4 = vld [vmem:[#allocation3 + $0x50] sm:$0xff]  }
 0x6a1   :  { %v1656_v24 = vpop.f32.mrb[45].mxu1 }
 0x6a2   :  { %v1705_v32 = vpack.c.bf16 %v3185_v5, %v1656_v24  ;;  %v3689_v5 = vld [vmem:[#allocation3 + $0x58] sm:$0xff]   ;;  %v3690_v24 = vld [vmem:[#allocation3 + $0x60] sm:$0xff]  }
 0x6a4   :  { %1727 = vrot.lane.b32.xlu0 %v1705_v32, %s3820_s26  ;;  %v3188_v42 = vpop.f32.mrb[46].mxu1  ;;  %v3691_v32 = vld [vmem:[#allocation3 + $0x68] sm:$0xff]  }
 0x6a5   :  { %v1666_v50 = vpop.f32.mrb[47].mxu1 }
 0x6a6   :  { %v1706_v51 = vpack.c.bf16 %v3188_v42, %v1666_v50  ;;  %v3692_v42 = vld [vmem:[#allocation3 + $0x70] sm:$0xff]   ;;  %v3693_v50 = vld [vmem:[#allocation3 + $0x78] sm:$0xff]  }
 0x6a8   :  { %1729 = vrot.lane.b32.xlu1 %v1706_v51, %s3820_s26 }
 0x6fe   :  { %v1716_v58 = vpop.permute.xlu0 %1715 }
 0x6ff   :  { %1739 = vst.msk [vmem:[#allocation2] sm:$0xff] %vm621_vm1, %v1716_v58 }
 0x702   :  { %v1718_v17 = vpop.permute.xlu1 %1717 }
 0x703   :  { %1740 = vst.msk [vmem:[#allocation2 + $0x8] sm:$0xff] %vm621_vm1, %v1718_v17 }
 0x706   :  { %v1720_v11 = vpop.permute.xlu0 %1719  ;;  %v1747_v61 = vld [vmem:[#allocation2] sm:$0xff] }
 0x707   :  { %1741 = vst.msk [vmem:[#allocation2 + $0x10] sm:$0xff] %vm621_vm1, %v1720_v11  ;;  %3189 = vmatprep.subr.bf16.mxu0 %v1747_v61 }
 0x708   :  { %3190 = vmatpush3.bf16.msra.mxu0 %v1747_v61 }
 0x70a   :  { %v1722_v56 = vpop.permute.xlu1 %1721  ;;  %v1748_v28 = vld [vmem:[#allocation2 + $0x8] sm:$0xff] }
 0x70b   :  { %1742 = vst.msk [vmem:[#allocation2 + $0x18] sm:$0xff] %vm621_vm1, %v1722_v56  ;;  %3191 = vmatprep.subr.bf16.mxu0 %v1748_v28 }
 0x70c   :  { %3192 = vmatpush3.bf16.msra.mxu0 %v1748_v28 }
 0x70e   :  { %v1724_v6 = vpop.permute.xlu0 %1723  ;;  %v1749_v39 = vld [vmem:[#allocation2 + $0x10] sm:$0xff] }
 0x70f   :  { %1743 = vst.msk [vmem:[#allocation2 + $0x20] sm:$0xff] %vm621_vm1, %v1724_v6  ;;  %3193 = vmatprep.subr.bf16.mxu0 %v1749_v39 }
 0x710   :  { %3194 = vmatpush3.bf16.msra.mxu0 %v1749_v39 }
 0x712   :  { %v1726_v37 = vpop.permute.xlu1 %1725  ;;  %v1750_v38 = vld [vmem:[#allocation2 + $0x18] sm:$0xff] }
 0x713   :  { %1744 = vst.msk [vmem:[#allocation2 + $0x28] sm:$0xff] %vm621_vm1, %v1726_v37  ;;  %3195 = vmatprep.subr.bf16.mxu0 %v1750_v38 }
 0x714   :  { %3196 = vmatpush3.bf16.msra.mxu0 %v1750_v38 }
 0x716   :  { %v1728_v10 = vpop.permute.xlu0 %1727  ;;  %v1751_v16 = vld [vmem:[#allocation2 + $0x20] sm:$0xff] }
 0x717   :  { %1745 = vst.msk [vmem:[#allocation2 + $0x30] sm:$0xff] %vm621_vm1, %v1728_v10  ;;  %3197 = vmatprep.subr.bf16.mxu0 %v1751_v16 }
 0x718   :  { %3198 = vmatpush3.bf16.msra.mxu0 %v1751_v16 }
 0x71a   :  { %v1730_v53 = vpop.permute.xlu1 %1729  ;;  %v1752_v9 = vld [vmem:[#allocation2 + $0x28] sm:$0xff] }
 0x71b   :  { %1746 = vst.msk [vmem:[#allocation2 + $0x38] sm:$0xff] %vm621_vm1, %v1730_v53  ;;  %3199 = vmatprep.subr.bf16.mxu0 %v1752_v9 }
 0x71c   :  { %3200 = vmatpush3.bf16.msra.mxu0 %v1752_v9 }
 0x71e   :  { %v1753_v57 = vld [vmem:[#allocation2 + $0x30] sm:$0xff] }
 0x71f   :  { %3201 = vmatprep.subr.bf16.mxu0 %v1753_v57 }
 0x720   :  { %3202 = vmatpush3.bf16.msra.mxu0 %v1753_v57 }
 0x722   :  { %v1754_v8 = vld [vmem:[#allocation2 + $0x38] sm:$0xff] }
 0x723   :  { %3203 = vmatprep.subr.bf16.mxu0 %v1754_v8 }
 0x724   :  { %3204 = vmatpush3.bf16.msra.mxu0 %v1754_v8 }
 0x727   :  { %3206 = vmatmul.mubr.bf16.vlgmr.msra.gmra.mrb[48].mxu0 %v3679_v45 }
 0x728   :  { %3209 = vmatprep.mubr.bf16.mxu0 %v3680_v52 }
 0x72f   :  { %3210 = vmatmul.mubr.bf16.gmra.mrb[52].mxu0 %v3681_v26 }
 0x730   :  { %3213 = vmatprep.mubr.bf16.mxu0 %v3682_v40 }
 0x737   :  { %3214 = vmatmul.mubr.bf16.gmra.mrb[56].mxu0 %v3683_v41 }
 0x738   :  { %3217 = vmatprep.mubr.bf16.mxu0 %v3684_v0 }
 0x73f   :  { %3218 = vmatmul.mubr.bf16.gmra.mrb[60].mxu0 %v3685_v48 }
 0x740   :  { %3221 = vmatprep.mubr.bf16.mxu0 %v3686_v55 }
 0x747   :  { %3222 = vmatmul.mubr.bf16.gmra.mrb[64].mxu0 %v3687_v2 }
 0x748   :  { %3225 = vmatprep.mubr.bf16.mxu0 %v3688_v4 }
 0x74f   :  { %3226 = vmatmul.mubr.bf16.gmra.mrb[68].mxu0 %v3689_v5 }
 0x750   :  { %3229 = vmatprep.mubr.bf16.mxu0 %v3690_v24 }
 0x757   :  { %3230 = vmatmul.mubr.bf16.gmra.mrb[72].mxu0 %v3691_v32 }
 0x758   :  { %3233 = vmatprep.mubr.bf16.mxu0 %v3692_v42 }
 0x75f   :  { %3234 = vmatmul.mubr.bf16.gmra.mrb[76].mxu0 %v3693_v50 }
 0x7fa   :  { %v4686_v51 = vpop.f32.mrb[48].mxu0 }
 0x7fb   :  { %v4688_v58 = vpop.f32.mrb[49].mxu0  ;;  %2050 = vrot.lane.b32.xlu0 %v4686_v51, %s3821_s5 }
 0x7fc   :  { %v4692_v17 = vpop.f32.mrb[50].mxu0 }
 0x7fd   :  { %v4694_v11 = vpop.f32.mrb[51].mxu0  ;;  %2052 = vrot.lane.b32.xlu1 %v4692_v17, %s3821_s5 }
 0x7ff   :  { %2046 = vrot.lane.b32.xlu0 %v4688_v58, %s3821_s5 }
 0x801   :  { %2048 = vrot.lane.b32.xlu1 %v4694_v11, %s3821_s5 }
 0x802   :  { %v4702_v61 = vpop.f32.mrb[52].mxu0 }
 0x803   :  { %v4704_v56 = vpop.f32.mrb[53].mxu0 }
 0x804   :  { %v4706_v28 = vpop.f32.mrb[54].mxu0  ;;  %2054 = vrot.lane.b32.xlu0 %v4704_v56, %s3821_s5 }
 0x805   :  { %v4710_v6 = vpop.f32.mrb[55].mxu0 }
 0x806   :  { %2056 = vrot.lane.b32.xlu1 %v4710_v6, %s3821_s5 }
 0x80a   :  { %v4714_v39 = vpop.f32.mrb[56].mxu0 }
 0x80b   :  { %v4716_v37 = vpop.f32.mrb[57].mxu0 }
 0x80c   :  { %v4718_v38 = vpop.f32.mrb[58].mxu0 }
 0x80d   :  { %v4720_v10 = vpop.f32.mrb[59].mxu0 }
 0x812   :  { %v4722_v16 = vpop.f32.mrb[60].mxu0 }
 0x813   :  { %v4724_v53 = vpop.f32.mrb[61].mxu0 }
 0x814   :  { %v4726_v9 = vpop.f32.mrb[62].mxu0 }
 0x815   :  { %v4728_v57 = vpop.f32.mrb[63].mxu0 }
 0x81a   :  { %v3223_v8 = vpop.f32.mrb[64].mxu0 }
 0x81b   :  { %1936 = vrot.lane.b32.xlu0 %v3223_v8, %s3822_s23  ;;  %v1853_v45 = vpop.f32.mrb[65].mxu0 }
 0x81c   :  { %v3224_v52 = vpop.f32.mrb[66].mxu0 }
 0x81d   :  { %1938 = vrot.lane.b32.xlu1 %v3224_v52, %s3822_s23  ;;  %v1856_v26 = vpop.f32.mrb[67].mxu0 }
 0x81f   :  { %1932 = vrot.lane.b32.xlu0 %v1853_v45, %s3822_s23 }
 0x821   :  { %1934 = vrot.lane.b32.xlu1 %v1856_v26, %s3822_s23 }
 0x822   :  { %v3227_v40 = vpop.f32.mrb[68].mxu0 }
 0x823   :  { %1944 = vrot.lane.b32.xlu0 %v3227_v40, %s3822_s23  ;;  %v1869_v41 = vpop.f32.mrb[69].mxu0 }
 0x824   :  { %v3228_v0 = vpop.f32.mrb[70].mxu0 }
 0x825   :  { %1946 = vrot.lane.b32.xlu1 %v3228_v0, %s3822_s23  ;;  %v1872_v48 = vpop.f32.mrb[71].mxu0 }
 0x827   :  { %1940 = vrot.lane.b32.xlu0 %v1869_v41, %s3822_s23 }
 0x829   :  { %1942 = vrot.lane.b32.xlu1 %v1872_v48, %s3822_s23 }
 0x82a   :  { %v3231_v55 = vpop.f32.mrb[72].mxu0 }
 0x82b   :  { %1952 = vrot.lane.b32.xlu0 %v3231_v55, %s3822_s23  ;;  %v1885_v2 = vpop.f32.mrb[73].mxu0 }
 0x82c   :  { %v3232_v4 = vpop.f32.mrb[74].mxu0 }
 0x82d   :  { %1954 = vrot.lane.b32.xlu1 %v3232_v4, %s3822_s23  ;;  %v1888_v5 = vpop.f32.mrb[75].mxu0  ;;  %v4773_v4 = vstv %s2731_s6 }
 0x82f   :  { %1948 = vrot.lane.b32.xlu0 %v1885_v2, %s3822_s23 }
 0x831   :  { %1950 = vrot.lane.b32.xlu1 %v1888_v5, %s3822_s23 }
 0x832   :  { %v3235_v24 = vpop.f32.mrb[76].mxu0 }
 0x833   :  { %2058 = vrot.lane.b32.xlu0 %v4702_v61, %s3821_s5  ;;  %v1901_v32 = vpop.f32.mrb[77].mxu0 }
 0x834   :  { %v3236_v42 = vpop.f32.mrb[78].mxu0 }
 0x835   :  { %2060 = vrot.lane.b32.xlu1 %v4706_v28, %s3821_s5  ;;  %v1904_v50 = vpop.f32.mrb[79].mxu0 }
 0x837   :  { %1956 = vrot.lane.b32.xlu0 %v1901_v32, %s3822_s23 }
 0x839   :  { %1958 = vrot.lane.b32.xlu1 %v1904_v50, %s3822_s23 }
 0x83b   :  { %1960 = vrot.lane.b32.xlu0 %v3235_v24, %s3822_s23 }
 0x83d   :  { %1962 = vrot.lane.b32.xlu1 %v3236_v42, %s3822_s23 }
 0x83f   :  { %2062 = vrot.lane.b32.xlu0 %v4716_v37, %s3821_s5 }
 0x841   :  { %2064 = vrot.lane.b32.xlu1 %v4720_v10, %s3821_s5 }
 0x843   :  { %2066 = vrot.lane.b32.xlu0 %v4714_v39, %s3821_s5 }
 0x845   :  { %2068 = vrot.lane.b32.xlu1 %v4718_v38, %s3821_s5 }
 0x847   :  { %2070 = vrot.lane.b32.xlu0 %v4724_v53, %s3821_s5 }
 0x849   :  { %2072 = vrot.lane.b32.xlu1 %v4728_v57, %s3821_s5 }
 0x84b   :  { %2074 = vrot.lane.b32.xlu0 %v4722_v16, %s3821_s5 }
 0x84d   :  { %2076 = vrot.lane.b32.xlu1 %v4726_v9, %s3821_s5 }
 0x86d   :  { %v4766_v8 = vpop.permute.xlu0 %2050 }
 0x86f   :  { %v2053_v45 = vpop.permute.xlu1 %2052 }
 0x871   :  { %v2047_v52 = vpop.permute.xlu0 %2046 }
 0x873   :  { %v2049_v26 = vpop.permute.xlu1 %2048 }
 0x876   :  { %v4768_v40 = vpop.permute.xlu0 %2054 }
 0x878   :  { %v4770_v41 = vpop.permute.xlu1 %2056 }
 0x88d   :  { %v1937_v0 = vpop.permute.xlu0 %1936 }
 0x88e   :  { %v1982_v5 = vadd.f32 %v4686_v51, %v1937_v0 }
 0x88f   :  { %v1939_v48 = vpop.permute.xlu1 %1938 }
 0x890   :  { %v1983_v55 = vadd.f32 %v4692_v17, %v1939_v48  ;;  %v2000_v22 = vadd.f32 %v4773_v4, %v1982_v5 }
 0x891   :  { %v1933_v2 = vpop.permute.xlu0 %1932 }
 0x892   :  { %v1980_v24 = vadd.f32 %v1933_v2, %v4688_v58  ;;  %v2001_v32 = vadd.f32 %v4773_v4, %v1983_v55 }
 0x893   :  { %v1935_v42 = vpop.permute.xlu1 %1934 }
 0x894   :  { %v1998_v50 = vadd.f32 %v4773_v4, %v1980_v24  ;;  %v1981_v35 = vadd.f32 %v1935_v42, %v4694_v11 }
 0x895   :  { %v1945_v14 = vpop.permute.xlu0 %1944 }
 0x896   :  { %3571 = vtanh.f32 %v1998_v50  ;;  %v1999_v48 = vadd.f32 %v4773_v4, %v1981_v35  ;;  %v1986_v0 = vadd.f32 %v4702_v61, %v1945_v14 }
 0x897   :  { %3573 = vtanh.f32 %v2001_v32  ;;  %v1947_v54 = vpop.permute.xlu1 %1946 }
 0x898   :  { %3575 = vtanh.f32 %v1999_v48  ;;  %v1987_v55 = vadd.f32 %v4706_v28, %v1947_v54  ;;  %v2004_v5 = vadd.f32 %v4773_v4, %v1986_v0 }
 0x899   :  { %v1941_v31 = vpop.permute.xlu0 %1940  ;;  %3577 = vtanh.f32 %v2000_v22 }
 0x89a   :  { %v1984_v2 = vadd.f32 %v1941_v31, %v4704_v56  ;;  %v2005_v35 = vadd.f32 %v4773_v4, %v1987_v55 }
 0x89b   :  { %v1943_v24 = vpop.permute.xlu1 %1942 }
 0x89c   :  { %v2002_v42 = vadd.f32 %v4773_v4, %v1984_v2  ;;  %v1985_v62 = vadd.f32 %v1943_v24, %v4710_v6 }
 0x89d   :  { %v1953_v50 = vpop.permute.xlu0 %1952 }
 0x89e   :  { %3579 = vtanh.f32 %v2002_v42  ;;  %v2003_v32 = vadd.f32 %v4773_v4, %v1985_v62  ;;  %v1990_v24 = vadd.f32 %v4714_v39, %v1953_v50 }
 0x89f   :  { %v1955_v14 = vpop.permute.xlu1 %1954 }
 0x8a0   :  { %v3572_v48 = vpop.eup %3571  ;;  %3581 = vtanh.f32 %v2003_v32  ;;  %v1991_v32 = vadd.f32 %v4718_v38, %v1955_v14 }
 0x8a1   :  { %v3574_v22 = vpop.eup %3573  ;;  %3583 = vtanh.f32 %v2004_v5  ;;  %v1949_v54 = vpop.permute.xlu0 %1948  ;;  %v2094_v31 = vmul.f32 %v3572_v48, %v2047_v52 }
 0x8a2   :  { %v3576_v60 = vpop.eup %3575  ;;  %3585 = vtanh.f32 %v2005_v35  ;;  %v1988_v2 = vadd.f32 %v1949_v54, %v4716_v37  ;;  %v2097_v5 = vmul.f32 %v3574_v22, %v2053_v45  ;;  %v2008_v35 = vadd.f32 %v4773_v4, %v1990_v24 }
 0x8a3   :  { %v1951_v0 = vpop.permute.xlu1 %1950  ;;  %2112 = vperm.xlu0 %3513, %v2094_v31   ;;  %v2095_v59 = vmul.f32 %v3576_v60, %v2049_v26  ;;  %v3578_v55 = vpop.eup %3577  ;;  %v2009_v26 = vadd.f32 %v4773_v4, %v1991_v32 }
 0x8a4   :  { %v2006_v42 = vadd.f32 %v4773_v4, %v1988_v2  ;;  %v1989_v62 = vadd.f32 %v1951_v0, %v4720_v10  ;;  %v2096_v50 = vmul.f32 %v3578_v55, %v4766_v8 }
 0x8a5   :  { %v2059_v34 = vpop.permute.xlu0 %2058  ;;  %2117 = vperm.xlu1 %3514, %v2095_v59  }
 0x8a6   :  { %3587 = vtanh.f32 %v2006_v42  ;;  %v2007_v52 = vadd.f32 %v4773_v4, %v1989_v62 }
 0x8a7   :  { %v2061_v48 = vpop.permute.xlu1 %2060  ;;  %2127 = vperm.xlu0 %3513, %v2097_v5  }
 0x8a8   :  { %v3580_v60 = vpop.eup %3579  ;;  %3589 = vtanh.f32 %v2007_v52 }
 0x8a9   :  { %v1957_v54 = vpop.permute.xlu0 %1956  ;;  %2122 = vperm.xlu1 %3514, %v2096_v50   ;;  %3591 = vtanh.f32 %v2008_v35  ;;  %v2098_v2 = vmul.f32 %v3580_v60, %v4768_v40 }
 0x8aa   :  { %v3582_v31 = vpop.eup %3581  ;;  %v1992_v14 = vadd.f32 %v1957_v54, %v4724_v53  ;;  %3593 = vtanh.f32 %v2009_v26 }
 0x8ab   :  { %v3584_v59 = vpop.eup %3583  ;;  %v1959_v45 = vpop.permute.xlu1 %1958  ;;  %v2099_v22 = vmul.f32 %v3582_v31, %v4770_v41 }
 0x8ac   :  { %v3586_v24 = vpop.eup %3585  ;;  %v2010_v0 = vadd.f32 %v4773_v4, %v1992_v14  ;;  %v1993_v8 = vadd.f32 %v1959_v45, %v4728_v57  ;;  %v2100_v32 = vmul.f32 %v3584_v59, %v2059_v34 }
 0x8ad   :  { %2137 = vperm.xlu0 %3513, %v2099_v22   ;;  %v1961_v55 = vpop.permute.xlu0 %1960  ;;  %2132 = vperm.xlu1 %3514, %v2098_v2   ;;  %v2101_v5 = vmul.f32 %v3586_v24, %v2061_v48 }
 0x8ae   :  { %3595 = vtanh.f32 %v2010_v0  ;;  %v2011_v42 = vadd.f32 %v4773_v4, %v1993_v8  ;;  %v1994_v62 = vadd.f32 %v4722_v16, %v1961_v55 }
 0x8af   :  { %v1963_v52 = vpop.permute.xlu1 %1962 }
 0x8b0   :  { %v3588_v41 = vpop.eup %3587  ;;  %3597 = vtanh.f32 %v2011_v42  ;;  %v2012_v40 = vadd.f32 %v4773_v4, %v1994_v62  ;;  %v1995_v35 = vadd.f32 %v4726_v9, %v1963_v52 }
 0x8b1   :  { %2147 = vperm.xlu0 %3513, %v2101_v5   ;;  %v2063_v50 = vpop.permute.xlu0 %2062  ;;  %2142 = vperm.xlu1 %3514, %v2100_v32  }
 0x8b2   :  { %v3590_v60 = vpop.eup %3589  ;;  %3599 = vtanh.f32 %v2012_v40  ;;  %v2013_v26 = vadd.f32 %v4773_v4, %v1995_v35  ;;  %v2102_v54 = vmul.f32 %v3588_v41, %v2063_v50 }
 0x8b3   :  { %v2065_v31 = vpop.permute.xlu1 %2064  ;;  %v3592_v34 = vpop.eup %3591 }
 0x8b4   :  { %3601 = vtanh.f32 %v2013_v26  ;;  %v2103_v14 = vmul.f32 %v3590_v60, %v2065_v31  ;;  %v3594_v45 = vpop.eup %3593 }
 0x8b5   :  { %v2067_v48 = vpop.permute.xlu0 %2066  ;;  %2152 = vperm.xlu1 %3514, %v2102_v54  }
 0x8b6   :  { %v2104_v59 = vmul.f32 %v3592_v34, %v2067_v48  ;;  %2157 = vperm.xlu0 %3513, %v2103_v14  }
 0x8b7   :  { %v2069_v22 = vpop.permute.xlu1 %2068 }
 0x8b8   :  { %v3596_v2 = vpop.eup %3595  ;;  %v2105_v24 = vmul.f32 %v3594_v45, %v2069_v22 }
 0x8b9   :  { %v2071_v0 = vpop.permute.xlu0 %2070  ;;  %2162 = vperm.xlu1 %3514, %v2104_v59  }
 0x8ba   :  { %v3598_v8 = vpop.eup %3597  ;;  %v2106_v55 = vmul.f32 %v3596_v2, %v2071_v0  ;;  %2167 = vperm.xlu0 %3513, %v2105_v24  }
 0x8bb   :  { %v2073_v42 = vpop.permute.xlu1 %2072 }
 0x8bc   :  { %v3600_v4 = vpop.eup %3599  ;;  %v2107_v62 = vmul.f32 %v3598_v8, %v2073_v42 }
 0x8bd   :  { %v2075_v32 = vpop.permute.xlu0 %2074  ;;  %2172 = vperm.xlu1 %3514, %v2106_v55  }
 0x8be   :  { %v3602_v5 = vpop.eup %3601  ;;  %v2108_v52 = vmul.f32 %v3600_v4, %v2075_v32  ;;  %2177 = vperm.xlu0 %3513, %v2107_v62  }
 0x8bf   :  { %v2077_v41 = vpop.permute.xlu1 %2076 }
 0x8c0   :  { %v2109_v40 = vmul.f32 %v3602_v5, %v2077_v41 }
 0x8c1   :  { %2182 = vperm.xlu1 %3514, %v2108_v52  }
 0x8c2   :  { %2187 = vperm.xlu0 %3513, %v2109_v40  }
 0x922   :  { %v2113_v35 = vpop.permute.xlu0 %2112 }
 0x923   :  { %v2190_v60 = vmul.f32 %v2113_v35, %v4688_v58 }
 0x924   :  { %v2118_v50 = vpop.permute.xlu1 %2117 }
 0x925   :  { %v2191_v26 = vmul.f32 %v2118_v50, %v4694_v11 }
 0x926   :  { %v2128_v54 = vpop.permute.xlu0 %2127 }
 0x927   :  { %v2206_v31 = vpack.c.bf16 %v2191_v26, %v2190_v60  ;;  %v2193_v34 = vmul.f32 %v4692_v17, %v2128_v54  ;;  %v2344_v26 = vld [vmem:[#allocation10 + $0x8] sm:$0xff] }
 0x928   :  { %v2123_v14 = vpop.permute.xlu1 %2122 }
 0x929   :  { %v2192_v48 = vmul.f32 %v4686_v51, %v2123_v14  ;;  %3237 = vmatprep.subr.bf16.mxu1 %v2206_v31  ;;  %v2345_v14 = vld [vmem:[#allocation10 + $0x10] sm:$0xff] }
 0x92a   :  { %3238 = vmatpush3.bf16.msra.mxu1 %v2206_v31 }
 0x92b   :  { %v2207_v59 = vpack.c.bf16 %v2193_v34, %v2192_v48  ;;  %v2347_v34 = vld [vmem:[#allocation10 + $0x20] sm:$0xff]  ;;  %v2348_v48 = vld [vmem:[#allocation10 + $0x28] sm:$0xff] }
 0x92c   :  { %v2138_v45 = vpop.permute.xlu0 %2137  ;;  %v2133_v22 = vpop.permute.xlu1 %2132 }
 0x92d   :  { %v2195_v2 = vmul.f32 %v2138_v45, %v4710_v6  ;;  %v2194_v24 = vmul.f32 %v2133_v22, %v4704_v56  ;;  %3239 = vmatprep.subr.bf16.mxu1 %v2207_v59  ;;  %v3429_v45 = vpack.c.bf16 %v2348_v48, %v2347_v34  ;;  %v2350_v22 = vld [vmem:[#allocation10 + $0x38] sm:$0xff] }
 0x92e   :  { %3240 = vmatpush3.bf16.msra.mxu1 %v2207_v59  ;;  %v3694_v59 = vld [vmem:[#allocation7 + $0x8] sm:$0xff]  }
 0x92f   :  { %v2208_v58 = vpack.c.bf16 %v2195_v2, %v2194_v24  ;;  %v2351_v24 = vld [vmem:[#allocation10 + $0x40] sm:$0xff] }
 0x930   :  { %v2148_v11 = vpop.permute.xlu0 %2147  ;;  %v2143_v0 = vpop.permute.xlu1 %2142 }
 0x931   :  { %v2197_v8 = vmul.f32 %v4706_v28, %v2148_v11  ;;  %v2196_v17 = vmul.f32 %v4702_v61, %v2143_v0  ;;  %3241 = vmatprep.subr.bf16.mxu1 %v2208_v58  ;;  %v3696_v11 = vld [vmem:[#allocation7 + $0x18] sm:$0xff]   ;;  %v3697_v0 = vld [vmem:[#allocation7 + $0x20] sm:$0xff]  }
 0x932   :  { %3242 = vmatpush3.bf16.msra.mxu1 %v2208_v58  ;;  %v2352_v58 = vld [vmem:[#allocation10 + $0x48] sm:$0xff] }
 0x933   :  { %v2209_v51 = vpack.c.bf16 %v2197_v8, %v2196_v17  ;;  %v3437_v8 = vpack.c.bf16 %v2352_v58, %v2351_v24  ;;  %v2353_v17 = vld [vmem:[#allocation10 + $0x50] sm:$0xff]  ;;  %v5062_v58 = vld [vmem:[#allocation20_spill] sm:$0xff] }
 0x934   :  { %v2153_v55 = vpop.permute.xlu1 %2152 }
 0x935   :  { %v2198_v42 = vmul.f32 %v2153_v55, %v4716_v37  ;;  %v2158_v4 = vpop.permute.xlu0 %2157  ;;  %3243 = vmatprep.subr.bf16.mxu1 %v2209_v51 }
 0x936   :  { %v2199_v6 = vmul.f32 %v2158_v4, %v4720_v10  ;;  %3244 = vmatpush3.bf16.msra.mxu1 %v2209_v51  ;;  %v2354_v51 = vld [vmem:[#allocation10 + $0x58] sm:$0xff]  ;;  %v3699_v4 = vld [vmem:[#allocation7 + $0x30] sm:$0xff]  }
 0x937   :  { %v3441_v55 = vpack.c.bf16 %v2354_v51, %v2353_v17  ;;  %v5066_v51 = vld [vmem:[#allocation18_spill] sm:$0xff] }
 0x938   :  { %v2210_v56 = vpack.c.bf16 %v2199_v6, %v2198_v42  ;;  %v2163_v62 = vpop.permute.xlu1 %2162  ;;  %v3698_v42 = vld [vmem:[#allocation7 + $0x28] sm:$0xff]   ;;  %v3700_v6 = vld [vmem:[#allocation7 + $0x38] sm:$0xff]  }
 0x939   :  { %v2200_v32 = vmul.f32 %v4714_v39, %v2163_v62  ;;  %v2168_v5 = vpop.permute.xlu0 %2167  ;;  %v2343_v39 = vld [vmem:[#allocation10] sm:$0xff]  ;;  %v2356_v62 = vld [vmem:[#allocation10 + $0x68] sm:$0xff] }
 0x93a   :  { %v2201_v28 = vmul.f32 %v4718_v38, %v2168_v5  ;;  %3245 = vmatprep.subr.bf16.mxu1 %v2210_v56  ;;  %v3421_v31 = vpack.c.bf16 %v2344_v26, %v2343_v39  ;;  %v2357_v5 = vld [vmem:[#allocation10 + $0x70] sm:$0xff] }
 0x93b   :  { %3246 = vmatpush3.bf16.msra.mxu1 %v2210_v56  ;;  %v2355_v56 = vld [vmem:[#allocation10 + $0x60] sm:$0xff] }
 0x93c   :  { %v2211_v61 = vpack.c.bf16 %v2201_v28, %v2200_v32  ;;  %v2173_v52 = vpop.permute.xlu1 %2172  ;;  %v3445_v32 = vpack.c.bf16 %v2356_v62, %v2355_v56  ;;  %v2358_v28 = vld [vmem:[#allocation10 + $0x78] sm:$0xff] }
 0x93d   :  { %v2202_v41 = vmul.f32 %v2173_v52, %v4724_v53  ;;  %v2178_v40 = vpop.permute.xlu0 %2177  ;;  %v2346_v53 = vld [vmem:[#allocation10 + $0x18] sm:$0xff] }
 0x93e   :  { %v2203_v37 = vmul.f32 %v2178_v40, %v4728_v57  ;;  %3247 = vmatprep.subr.bf16.mxu1 %v2211_v61  ;;  %v3425_v57 = vpack.c.bf16 %v2346_v53, %v2345_v14 }
 0x93f   :  { %3248 = vmatpush3.bf16.msra.mxu1 %v2211_v61  ;;  %v3449_v61 = vpack.c.bf16 %v2358_v28, %v2357_v5 }
 0x940   :  { %v2212_v10 = vpack.c.bf16 %v2203_v37, %v2202_v41  ;;  %v2183_v35 = vpop.permute.xlu1 %2182 }
 0x941   :  { %v2204_v50 = vmul.f32 %v4722_v16, %v2183_v35  ;;  %v2188_v60 = vpop.permute.xlu0 %2187  ;;  %v3695_v16 = vld [vmem:[#allocation7 + $0x10] sm:$0xff]  }
 0x942   :  { %v2205_v38 = vmul.f32 %v4726_v9, %v2188_v60  ;;  %3249 = vmatprep.subr.bf16.mxu1 %v2212_v10  ;;  %v2349_v9 = vld [vmem:[#allocation10 + $0x30] sm:$0xff] }
 0x943   :  { %3250 = vmatpush3.bf16.msra.mxu1 %v2212_v10  ;;  %v3433_v2 = vpack.c.bf16 %v2350_v22, %v2349_v9 }
 0x944   :  { %v2213_v54 = vpack.c.bf16 %v2205_v38, %v2204_v50 }
 0x946   :  { %3251 = vmatprep.subr.bf16.mxu1 %v2213_v54 }
 0x947   :  { %3252 = vmatpush3.bf16.msra.mxu1 %v2213_v54 }
 0x948   :  { %3422 = vmatprep.subr.bf16.mxu1 %v3421_v31 }
 0x94a   :  { %3254 = vmatmul.mubr.bf16.vlgmr.msra.gmra.mrb[48].mxu1 %v3694_v59 }
 0x94b   :  { %3257 = vmatprep.mubr.bf16.mxu1 %v3695_v16  ;;  %3424 = vmatpush3.bf16.msra.mxu1 %v3421_v31 }
 0x94c   :  { %3426 = vmatprep.subr.bf16.mxu1 %v3425_v57 }
 0x94f   :  { %3428 = vmatpush3.bf16.msra.mxu1 %v3425_v57 }
 0x950   :  { %3430 = vmatprep.subr.bf16.mxu1 %v3429_v45 }
 0x952   :  { %3258 = vmatmul.mubr.bf16.gmra.mrb[52].mxu1 %v3696_v11 }
 0x953   :  { %3261 = vmatprep.mubr.bf16.mxu1 %v3697_v0  ;;  %3432 = vmatpush3.bf16.msra.mxu1 %v3429_v45 }
 0x954   :  { %3434 = vmatprep.subr.bf16.mxu1 %v3433_v2 }
 0x957   :  { %3436 = vmatpush3.bf16.msra.mxu1 %v3433_v2 }
 0x958   :  { %3438 = vmatprep.subr.bf16.mxu1 %v3437_v8 }
 0x95a   :  { %3262 = vmatmul.mubr.bf16.gmra.mrb[56].mxu1 %v3698_v42  ;;  %v5067_v42 = vld [vmem:[#allocation33_spill] sm:$0xff] }
 0x95b   :  { %3265 = vmatprep.mubr.bf16.mxu1 %v3699_v4  ;;  %3440 = vmatpush3.bf16.msra.mxu1 %v3437_v8 }
 0x95c   :  { %3442 = vmatprep.subr.bf16.mxu1 %v3441_v55 }
 0x95f   :  { %3444 = vmatpush3.bf16.msra.mxu1 %v3441_v55 }
 0x960   :  { %3446 = vmatprep.subr.bf16.mxu1 %v3445_v32 }
 0x962   :  { %3266 = vmatmul.mubr.bf16.gmra.mrb[60].mxu1 %v3700_v6  ;;  %v2732_v6 = vld [vmem:[%s4972_s9] ss:$0 sm:$0xff]  ;;  %s3826_s9 = smov [#allocation11]  }
 0x963   :  { %3448 = vmatpush3.bf16.msra.mxu1 %v3445_v32  ;;  %s2692_s23 = sshll.u32 %s3826_s9, 4  ;;  %s2693_s23 = int_to_ptr.vmem [resolvable:$true] %s2692_s23 }
 0x964   :  { %3450 = vmatprep.subr.bf16.mxu1 %v3449_v61  ;;  %s3779_s25 = scalar_lea.vmem %s2693_s23, 2048  ;;  %p3784_p2 = scmp.lt.s32.totalorder %s2693_s23, %s2693_s23 }
 0x965   :  { %p3780_p1 = scmp.ne.s32.totalorder %s2693_s23, %s3779_s25  ;;  %p3785_p3 = scmp.lt.s32.totalorder %s3779_s25, %s3779_s25 }
 0x967   :  { %3452 = vmatpush3.bf16.msra.mxu1 %v3449_v61  ;;  %p3786_p4 = por %p3785_p3, %p3784_p2 }
 0x969   :  { %p3787_p5 = pnand %p3786_p4, %p3780_p1 }
 0xa1d   :  { %v3255_v52 = vpop.f32.mrb[48].mxu1 }
 0xa1e   :  { %v2248_v41 = vpop.f32.mrb[49].mxu1  ;;  %v2313_v10 = vmul.f32 %v3255_v52, %v4543_v12 }
 0xa1f   :  { %v2311_v40 = vmul.f32 %v2248_v41, %v4541_v43  ;;  %v3256_v37 = vpop.f32.mrb[50].mxu1 }
 0xa20   :  { %v2251_v35 = vpop.f32.mrb[51].mxu1  ;;  %v2314_v39 = vmul.f32 %v3256_v37, %v4547_v30  ;;  %v2329_v38 = vadd.f32 %v2313_v10, %v4563_v36 }
 0xa21   :  { %v2327_v50 = vadd.f32 %v2311_v40, %v4560_v27  ;;  %v2312_v60 = vmul.f32 %v2251_v35, %v4545_v47 }
 0xa22   :  { %v2330_v43 = vadd.f32 %v2314_v39, %v4567_v33 }
 0xa23   :  { %v2328_v26 = vadd.f32 %v2312_v60, %v4572_v15  ;;  %3301 = vmatprep.mubr.f32.mxu1 %v2327_v50 }
 0xa25   :  { %v3259_v54 = vpop.f32.mrb[52].mxu1  ;;  %3302 = vmatmul.mubr.f32.vlgmr.msra.gmra.mrb[64].mxu1 %v2328_v26 }
 0xa26   :  { %v2264_v31 = vpop.f32.mrb[53].mxu1  ;;  %3304 = vmatprep.mubr.f32.mxu1 %v2329_v38  ;;  %v2317_v27 = vmul.f32 %v3259_v54, %v4553_v19 }
 0xa27   :  { %v2315_v12 = vmul.f32 %v2264_v31, %v4549_v29  ;;  %v3260_v14 = vpop.f32.mrb[54].mxu1 }
 0xa28   :  { %v2267_v53 = vpop.f32.mrb[55].mxu1  ;;  %v2318_v15 = vmul.f32 %v3260_v14, %v4556_v21  ;;  %v2333_v57 = vadd.f32 %v2317_v27, %v4591_v44 }
 0xa29   :  { %v2331_v47 = vadd.f32 %v2315_v12, %v4586_v3  ;;  %v2316_v30 = vmul.f32 %v2267_v53, %v4551_v23  ;;  %3305 = vmatmul.mubr.f32.gmra.mrb[66].mxu1 %v2330_v43 }
 0xa2a   :  { %v2334_v29 = vadd.f32 %v2318_v15, %v4595_v1 }
 0xa2b   :  { %v2332_v36 = vadd.f32 %v2316_v30, %v4602_v13  ;;  %3307 = vmatprep.mubr.f32.mxu1 %v2331_v47 }
 0xa2d   :  { %v3263_v34 = vpop.f32.mrb[56].mxu1  ;;  %3308 = vmatmul.mubr.f32.gmra.mrb[68].mxu1 %v2332_v36 }
 0xa2e   :  { %v2280_v33 = vpop.f32.mrb[57].mxu1  ;;  %3310 = vmatprep.mubr.f32.mxu1 %v2333_v57  ;;  %v2321_v3 = vmul.f32 %v3263_v34, %v4597_v63  ;;  %v5060_v63 = vld [vmem:[#allocation17_spill] sm:$0xff] }
 0xa2f   :  { %v2319_v19 = vmul.f32 %v2280_v33, %v4576_v46  ;;  %v3264_v48 = vpop.f32.mrb[58].mxu1  ;;  %v5059_v46 = vld [vmem:[#allocation31_spill] sm:$0xff] }
 0xa30   :  { %v2283_v23 = vpop.f32.mrb[59].mxu1  ;;  %v2322_v13 = vmul.f32 %v3264_v48, %v4606_v25  ;;  %v2337_v16 = vadd.f32 %v2321_v3, %v4621_v49  ;;  %v5063_v25 = vld [vmem:[#allocation19_spill] sm:$0xff] }
 0xa31   :  { %v2335_v59 = vadd.f32 %v2319_v19, %v4616_v7  ;;  %v2320_v21 = vmul.f32 %v2283_v23, %v4579_v18  ;;  %3311 = vmatmul.mubr.f32.gmra.mrb[70].mxu1 %v2334_v29  ;;  %v5061_v7 = vld [vmem:[#allocation30_spill] sm:$0xff]  ;;  %v5065_v49 = vld [vmem:[#allocation23_spill] sm:$0xff] }
 0xa32   :  { %v2338_v9 = vadd.f32 %v2322_v13, %v5059_v46 }
 0xa33   :  { %v2336_v44 = vadd.f32 %v2320_v21, %v4632_v20  ;;  %3313 = vmatprep.mubr.f32.mxu1 %v2335_v59  ;;  %v5064_v20 = vld [vmem:[#allocation21_spill] sm:$0xff] }
 0xa35   :  { %v3267_v45 = vpop.f32.mrb[60].mxu1  ;;  %3314 = vmatmul.mubr.f32.gmra.mrb[72].mxu1 %v2336_v44 }
 0xa36   :  { %v2296_v1 = vpop.f32.mrb[61].mxu1  ;;  %3316 = vmatprep.mubr.f32.mxu1 %v2337_v16  ;;  %v2325_v24 = vmul.f32 %v3267_v45, %v5061_v7 }
 0xa37   :  { %v2323_v22 = vmul.f32 %v2296_v1, %v5060_v63  ;;  %v3268_v2 = vpop.f32.mrb[62].mxu1 }
 0xa38   :  { %v2299_v18 = vpop.f32.mrb[63].mxu1  ;;  %v2326_v8 = vmul.f32 %v3268_v2, %v5064_v20  ;;  %v2341_v55 = vadd.f32 %v2325_v24, %v5066_v51 }
 0xa39   :  { %v2339_v11 = vadd.f32 %v2323_v22, %v5062_v58  ;;  %v2324_v0 = vmul.f32 %v2299_v18, %v5063_v25  ;;  %3317 = vmatmul.mubr.f32.gmra.mrb[74].mxu1 %v2338_v9 }
 0xa3a   :  { %v2342_v4 = vadd.f32 %v2326_v8, %v5067_v42 }
 0xa3b   :  { %v2340_v17 = vadd.f32 %v2324_v0, %v5065_v49  ;;  %3319 = vmatprep.mubr.f32.mxu1 %v2339_v11 }
 0xa3d   :  { %3320 = vmatmul.mubr.f32.gmra.mrb[76].mxu1 %v2340_v17 }
 0xa3e   :  { %3322 = vmatprep.mubr.f32.mxu1 %v2341_v55 }
 0xa41   :  { %3323 = vmatmul.mubr.f32.gmra.mrb[78].mxu1 %v2342_v4 }
 0xaf8   :  { %v3303_v56 = vpop.f32.mrb[64].mxu1 }
 0xaf9   :  { %v2438_v62 = vadd.f32 %v3303_v56, %v2732_v6  ;;  %v2432_v32 = vpop.f32.mrb[65].mxu1 }
 0xafa   :  { %v2433_v5 = vadd.f32 %v2732_v6, %v2432_v32 }
 0xafb   :  { %2513 = vmax.xlane.f32.xlu0 %v2438_v62 }
 0xafc   :  { %v3306_v28 = vpop.f32.mrb[66].mxu1  ;;  %2511 = vmax.xlane.f32.xlu1 %v2433_v5 }
 0xafd   :  { %v2448_v61 = vadd.f32 %v3306_v28, %v2732_v6  ;;  %v2442_v52 = vpop.f32.mrb[67].mxu1 }
 0xafe   :  { %v2443_v41 = vadd.f32 %v2732_v6, %v2442_v52 }
 0xb00   :  { %v3309_v40 = vpop.f32.mrb[68].mxu1  ;;  %2515 = vmax.xlane.f32.xlu0 %v2443_v41  ;;  %2517 = vmax.xlane.f32.xlu1 %v2448_v61 }
 0xb01   :  { %v2458_v37 = vadd.f32 %v3309_v40, %v2732_v6  ;;  %v2452_v10 = vpop.f32.mrb[69].mxu1 }
 0xb02   :  { %v2453_v35 = vadd.f32 %v2732_v6, %v2452_v10 }
 0xb04   :  { %v3312_v50 = vpop.f32.mrb[70].mxu1  ;;  %2519 = vmax.xlane.f32.xlu0 %v2453_v35  ;;  %2521 = vmax.xlane.f32.xlu1 %v2458_v37 }
 0xb05   :  { %v2468_v60 = vadd.f32 %v3312_v50, %v2732_v6  ;;  %v2462_v39 = vpop.f32.mrb[71].mxu1 }
 0xb06   :  { %v2463_v26 = vadd.f32 %v2732_v6, %v2462_v39 }
 0xb08   :  { %v3315_v38 = vpop.f32.mrb[72].mxu1  ;;  %2523 = vmax.xlane.f32.xlu0 %v2463_v26  ;;  %2525 = vmax.xlane.f32.xlu1 %v2468_v60 }
 0xb09   :  { %v2478_v54 = vadd.f32 %v3315_v38, %v2732_v6  ;;  %v2472_v31 = vpop.f32.mrb[73].mxu1 }
 0xb0a   :  { %v2473_v43 = vadd.f32 %v2732_v6, %v2472_v31 }
 0xb0c   :  { %v3318_v12 = vpop.f32.mrb[74].mxu1  ;;  %2527 = vmax.xlane.f32.xlu0 %v2473_v43  ;;  %2529 = vmax.xlane.f32.xlu1 %v2478_v54 }
 0xb0d   :  { %v4860_v14 = vadd.f32 %v3318_v12, %v2732_v6  ;;  %v2482_v27 = vpop.f32.mrb[75].mxu1 }
 0xb0e   :  { %v4862_v53 = vadd.f32 %v2732_v6, %v2482_v27 }
 0xb10   :  { %2531 = vmax.xlane.f32.xlu0 %v4862_v53  ;;  %2533 = vmax.xlane.f32.xlu1 %v4860_v14  ;;  %v3321_v47 = vpop.f32.mrb[76].mxu1 }
 0xb11   :  { %v4866_v30 = vadd.f32 %v3321_v47, %v2732_v6  ;;  %v2492_v15 = vpop.f32.mrb[77].mxu1 }
 0xb12   :  { %v4868_v36 = vadd.f32 %v2732_v6, %v2492_v15 }
 0xb14   :  { %2537 = vmax.xlane.f32.xlu1 %v4866_v30  ;;  %v3324_v57 = vpop.f32.mrb[78].mxu1  ;;  %2535 = vmax.xlane.f32.xlu0 %v4868_v36 }
 0xb15   :  { %v4872_v34 = vadd.f32 %v3324_v57, %v2732_v6  ;;  %v2502_v33 = vpop.f32.mrb[79].mxu1 }
 0xb16   :  { %v4874_v29 = vadd.f32 %v2732_v6, %v2502_v33 }
 0xb18   :  { %2541 = vmax.xlane.f32.xlu1 %v4872_v34  ;;  %2539 = vmax.xlane.f32.xlu0 %v4874_v29 }
 0xb88   :  { %v2514_v19 = vpop.xlane.xlu0 %2513 }
 0xb89   :  { %v4878_v48 = vsub.f32 %v2438_v62, %v2514_v19  ;;  %v2512_v3 = vpop.xlane.xlu1 %2511 }
 0xb8a   :  { %v4880_v23 = vsub.f32 %v2433_v5, %v2512_v3 }
 0xb8b   :  { %v2561_v59 = vmul.f32 1.442695, %v4878_v48 }
 0xb8c   :  { %v2559_v21 = vmul.f32 1.442695, %v4880_v23 }
 0xb8d   :  { %3603 = vpow2.f32 %v2561_v59  ;;  %v2516_v13 = vpop.xlane.xlu0 %2515  ;;  %v2518_v44 = vpop.xlane.xlu1 %2517 }
 0xb8e   :  { %3605 = vpow2.f32 %v2559_v21  ;;  %v4884_v16 = vsub.f32 %v2443_v41, %v2516_v13  ;;  %v4886_v45 = vsub.f32 %v2448_v61, %v2518_v44 }
 0xb90   :  { %v2563_v1 = vmul.f32 1.442695, %v4884_v16  ;;  %v2565_v46 = vmul.f32 1.442695, %v4886_v45 }
 0xb91   :  { %v2520_v9 = vpop.xlane.xlu0 %2519  ;;  %v2522_v63 = vpop.xlane.xlu1 %2521 }
 0xb92   :  { %3607 = vpow2.f32 %v2563_v1  ;;  %v4890_v22 = vsub.f32 %v2453_v35, %v2520_v9  ;;  %v4892_v2 = vsub.f32 %v2458_v37, %v2522_v63 }
 0xb93   :  { %3609 = vpow2.f32 %v2565_v46 }
 0xb94   :  { %v2567_v7 = vmul.f32 1.442695, %v4890_v22  ;;  %v2569_v24 = vmul.f32 1.442695, %v4892_v2 }
 0xb95   :  { %v2524_v18 = vpop.xlane.xlu0 %2523  ;;  %v2526_v58 = vpop.xlane.xlu1 %2525 }
 0xb96   :  { %3611 = vpow2.f32 %v2567_v7  ;;  %v4896_v11 = vsub.f32 %v2463_v26, %v2524_v18  ;;  %v4898_v25 = vsub.f32 %v2468_v60, %v2526_v58 }
 0xb97   :  { %v3604_v0 = vpop.eup %3603  ;;  %3613 = vpow2.f32 %v2569_v24 }
 0xb98   :  { %v3606_v20 = vpop.eup %3605  ;;  %v2571_v8 = vmul.f32 1.442695, %v4896_v11  ;;  %v2573_v49 = vmul.f32 1.442695, %v4898_v25  ;;  %2593 = vadd.xlane.f32.xlu1 %v3604_v0 }
 0xb99   :  { %v2528_v17 = vpop.xlane.xlu0 %2527  ;;  %v2530_v51 = vpop.xlane.xlu1 %2529  ;;  %2591 = vadd.xlane.f32.xlu0 %v3606_v20 }
 0xb9a   :  { %3615 = vpow2.f32 %v2571_v8  ;;  %v4902_v55 = vsub.f32 %v2473_v43, %v2528_v17  ;;  %v4904_v42 = vsub.f32 %v2478_v54, %v2530_v51 }
 0xb9b   :  { %3617 = vpow2.f32 %v2573_v49 }
 0xb9c   :  { %v3608_v4 = vpop.eup %3607  ;;  %v2575_v6 = vmul.f32 1.442695, %v4902_v55  ;;  %v2577_v56 = vmul.f32 1.442695, %v4904_v42 }
 0xb9d   :  { %v3610_v62 = vpop.eup %3609  ;;  %v2532_v32 = vpop.xlane.xlu0 %2531  ;;  %2595 = vadd.xlane.f32.xlu0 %v3608_v4 }
 0xb9e   :  { %v2534_v5 = vpop.xlane.xlu1 %2533  ;;  %3619 = vpow2.f32 %v2575_v6  ;;  %v4909_v28 = vsub.f32 %v4862_v53, %v2532_v32  ;;  %2597 = vadd.xlane.f32.xlu1 %v3610_v62 }
 0xb9f   :  { %v4912_v61 = vsub.f32 %v4860_v14, %v2534_v5  ;;  %3621 = vpow2.f32 %v2577_v56 }
 0xba0   :  { %v3612_v52 = vpop.eup %3611  ;;  %v2579_v41 = vmul.f32 1.442695, %v4909_v28 }
 0xba1   :  { %v2581_v40 = vmul.f32 1.442695, %v4912_v61  ;;  %v3614_v37 = vpop.eup %3613  ;;  %2599 = vadd.xlane.f32.xlu0 %v3612_v52  ;;  %v2536_v35 = vpop.xlane.xlu0 %2535 }
 0xba2   :  { %v2538_v10 = vpop.xlane.xlu1 %2537  ;;  %3623 = vpow2.f32 %v2579_v41  ;;  %2601 = vadd.xlane.f32.xlu1 %v3614_v37  ;;  %v4920_v60 = vsub.f32 %v4868_v36, %v2536_v35 }
 0xba3   :  { %v4917_v50 = vsub.f32 %v4866_v30, %v2538_v10  ;;  %3625 = vpow2.f32 %v2581_v40 }
 0xba4   :  { %v3616_v39 = vpop.eup %3615  ;;  %v2583_v38 = vmul.f32 1.442695, %v4920_v60 }
 0xba5   :  { %v2585_v26 = vmul.f32 1.442695, %v4917_v50  ;;  %v3618_v54 = vpop.eup %3617  ;;  %2603 = vadd.xlane.f32.xlu0 %v3616_v39  ;;  %v2540_v43 = vpop.xlane.xlu0 %2539 }
 0xba6   :  { %v2542_v31 = vpop.xlane.xlu1 %2541  ;;  %2605 = vadd.xlane.f32.xlu1 %v3618_v54  ;;  %v4928_v14 = vsub.f32 %v4874_v29, %v2540_v43 }
 0xba7   :  { %3627 = vpow2.f32 %v2585_v26  ;;  %v4925_v12 = vsub.f32 %v4872_v34, %v2542_v31 }
 0xba8   :  { %3629 = vpow2.f32 %v2583_v38  ;;  %v3620_v27 = vpop.eup %3619  ;;  %v2587_v47 = vmul.f32 1.442695, %v4928_v14 }
 0xba9   :  { %v2589_v53 = vmul.f32 1.442695, %v4925_v12  ;;  %v3622_v30 = vpop.eup %3621  ;;  %2607 = vadd.xlane.f32.xlu0 %v3620_v27 }
 0xbaa   :  { %2609 = vadd.xlane.f32.xlu1 %v3622_v30 }
 0xbab   :  { %3631 = vpow2.f32 %v2589_v53 }
 0xbac   :  { %3633 = vpow2.f32 %v2587_v47  ;;  %v3624_v15 = vpop.eup %3623 }
 0xbad   :  { %v3626_v36 = vpop.eup %3625  ;;  %2611 = vadd.xlane.f32.xlu0 %v3624_v15 }
 0xbae   :  { %2613 = vadd.xlane.f32.xlu1 %v3626_v36 }
 0xbb1   :  { %v3628_v57 = vpop.eup %3627 }
 0xbb2   :  { %v3630_v34 = vpop.eup %3629  ;;  %2617 = vadd.xlane.f32.xlu1 %v3628_v57 }
 0xbb3   :  { %2615 = vadd.xlane.f32.xlu0 %v3630_v34 }
 0xbb5   :  { %v3632_v33 = vpop.eup %3631 }
 0xbb6   :  { %v3634_v29 = vpop.eup %3633  ;;  %2621 = vadd.xlane.f32.xlu1 %v3632_v33 }
 0xbb7   :  { %2619 = vadd.xlane.f32.xlu0 %v3634_v29 }
 0xc25   :  { %v2594_v19 = vpop.xlane.xlu1 %2593 }
 0xc26   :  { %3635 = vlog2.f32 %v2594_v19  ;;  %v2592_v3 = vpop.xlane.xlu0 %2591 }
 0xc27   :  { %3637 = vlog2.f32 %v2592_v3 }
 0xc2a   :  { %v2596_v59 = vpop.xlane.xlu0 %2595 }
 0xc2b   :  { %v2598_v21 = vpop.xlane.xlu1 %2597  ;;  %3639 = vlog2.f32 %v2596_v59 }
 0xc2c   :  { %3641 = vlog2.f32 %v2598_v21 }
 0xc2e   :  { %v2600_v13 = vpop.xlane.xlu0 %2599 }
 0xc2f   :  { %v2602_v44 = vpop.xlane.xlu1 %2601  ;;  %3643 = vlog2.f32 %v2600_v13 }
 0xc30   :  { %v3636_v1 = vpop.eup %3635  ;;  %3645 = vlog2.f32 %v2602_v44 }
 0xc31   :  { %v3638_v46 = vpop.eup %3637  ;;  %v2626_v9 = vmul.f32 0.6931472, %v3636_v1 }
 0xc32   :  { %v2624_v63 = vmul.f32 0.6931472, %v3638_v46  ;;  %v2604_v7 = vpop.xlane.xlu0 %2603 }
 0xc33   :  { %v2656_v24 = vsub.f32 %v4878_v48, %v2626_v9  ;;  %v2606_v18 = vpop.xlane.xlu1 %2605  ;;  %3647 = vlog2.f32 %v2604_v7 }
 0xc34   :  { %v2655_v58 = vsub.f32 %v4880_v23, %v2624_v63  ;;  %3649 = vlog2.f32 %v2606_v18 }
 0xc35   :  { %v3640_v0 = vpop.eup %3639  ;;  %2672 = vst [vmem:[#allocation11 + $0x8] sm:$0xff] %v2656_v24 }
 0xc36   :  { %v3642_v20 = vpop.eup %3641  ;;  %2671 = vst [vmem:[#allocation11] sm:$0xff] %v2655_v58  ;;  %v2628_v8 = vmul.f32 0.6931472, %v3640_v0  ;;  %v2608_v49 = vpop.xlane.xlu0 %2607 }
 0xc37   :  { %v2630_v17 = vmul.f32 0.6931472, %v3642_v20  ;;  %v2610_v51 = vpop.xlane.xlu1 %2609  ;;  %3651 = vlog2.f32 %v2608_v49 }
 0xc38   :  { %v2657_v4 = vsub.f32 %v4884_v16, %v2628_v8  ;;  %3653 = vlog2.f32 %v2610_v51 }
 0xc39   :  { %v3644_v6 = vpop.eup %3643  ;;  %v2658_v48 = vsub.f32 %v4886_v45, %v2630_v17 }
 0xc3a   :  { %v3646_v56 = vpop.eup %3645  ;;  %2673 = vst [vmem:[#allocation11 + $0x10] sm:$0xff] %v2657_v4  ;;  %v2632_v62 = vmul.f32 0.6931472, %v3644_v6  ;;  %v2612_v23 = vpop.xlane.xlu0 %2611 }
 0xc3b   :  { %2674 = vst [vmem:[#allocation11 + $0x18] sm:$0xff] %v2658_v48  ;;  %v2634_v32 = vmul.f32 0.6931472, %v3646_v56  ;;  %v2614_v5 = vpop.xlane.xlu1 %2613  ;;  %3655 = vlog2.f32 %v2612_v23 }
 0xc3c   :  { %v2659_v52 = vsub.f32 %v4890_v22, %v2632_v62  ;;  %3657 = vlog2.f32 %v2614_v5 }
 0xc3d   :  { %v3648_v41 = vpop.eup %3647  ;;  %v2660_v40 = vsub.f32 %v4892_v2, %v2634_v32 }
 0xc3e   :  { %v3650_v37 = vpop.eup %3649  ;;  %2675 = vst [vmem:[#allocation11 + $0x20] sm:$0xff] %v2659_v52  ;;  %v2636_v16 = vmul.f32 0.6931472, %v3648_v41 }
 0xc3f   :  { %2676 = vst [vmem:[#allocation11 + $0x28] sm:$0xff] %v2660_v40  ;;  %v2638_v10 = vmul.f32 0.6931472, %v3650_v37  ;;  %v2618_v45 = vpop.xlane.xlu1 %2617 }
 0xc40   :  { %v2616_v35 = vpop.xlane.xlu0 %2615  ;;  %v2661_v39 = vsub.f32 %v4896_v11, %v2636_v16  ;;  %3659 = vlog2.f32 %v2618_v45 }
 0xc41   :  { %v3652_v26 = vpop.eup %3651  ;;  %v2662_v38 = vsub.f32 %v4898_v25, %v2638_v10  ;;  %3661 = vlog2.f32 %v2616_v35 }
 0xc42   :  { %v3654_v54 = vpop.eup %3653  ;;  %2677 = vst [vmem:[#allocation11 + $0x30] sm:$0xff] %v2661_v39  ;;  %v2640_v22 = vmul.f32 0.6931472, %v3652_v26 }
 0xc43   :  { %2678 = vst [vmem:[#allocation11 + $0x38] sm:$0xff] %v2662_v38  ;;  %v2642_v31 = vmul.f32 0.6931472, %v3654_v54  ;;  %v2622_v2 = vpop.xlane.xlu1 %2621 }
 0xc44   :  { %v2620_v43 = vpop.xlane.xlu0 %2619  ;;  %v2663_v27 = vsub.f32 %v4902_v55, %v2640_v22  ;;  %3663 = vlog2.f32 %v2622_v2 }
 0xc45   :  { %v3656_v53 = vpop.eup %3655  ;;  %v2664_v47 = vsub.f32 %v4904_v42, %v2642_v31  ;;  %3665 = vlog2.f32 %v2620_v43 }
 0xc46   :  { %v3658_v11 = vpop.eup %3657  ;;  %2679 = vst [vmem:[#allocation11 + $0x40] sm:$0xff] %v2663_v27  ;;  %v2644_v30 = vmul.f32 0.6931472, %v3656_v53 }
 0xc47   :  { %2680 = vst [vmem:[#allocation11 + $0x48] sm:$0xff] %v2664_v47  ;;  %v2646_v25 = vmul.f32 0.6931472, %v3658_v11 }
 0xc48   :  { %v2665_v15 = vsub.f32 %v4909_v28, %v2644_v30 }
 0xc49   :  { %v2666_v36 = vsub.f32 %v4912_v61, %v2646_v25 }
 0xc4a   :  { %v3660_v57 = vpop.eup %3659  ;;  %2681 = vst [vmem:[#allocation11 + $0x50] sm:$0xff] %v2665_v15 }
 0xc4b   :  { %v3662_v34 = vpop.eup %3661  ;;  %2682 = vst [vmem:[#allocation11 + $0x58] sm:$0xff] %v2666_v36  ;;  %v2650_v33 = vmul.f32 0.6931472, %v3660_v57 }
 0xc4c   :  { %v2648_v55 = vmul.f32 0.6931472, %v3662_v34 }
 0xc4d   :  { %v2668_v29 = vsub.f32 %v4917_v50, %v2650_v33 }
 0xc4e   :  { %v3664_v19 = vpop.eup %3663  ;;  %v2667_v42 = vsub.f32 %v4920_v60, %v2648_v55 }
 0xc4f   :  { %v3666_v3 = vpop.eup %3665  ;;  %2684 = vst [vmem:[#allocation11 + $0x68] sm:$0xff] %v2668_v29  ;;  %v2654_v59 = vmul.f32 0.6931472, %v3664_v19 }
 0xc50   :  { %2683 = vst [vmem:[#allocation11 + $0x60] sm:$0xff] %v2667_v42  ;;  %v2652_v28 = vmul.f32 0.6931472, %v3666_v3 }
 0xc51   :  { %v2670_v61 = vsub.f32 %v4925_v12, %v2654_v59 }
 0xc52   :  { %v2669_v21 = vsub.f32 %v4928_v14, %v2652_v28 }
 0xc53   :  { %2686 = vst [vmem:[#allocation11 + $0x78] sm:$0xff] %v2670_v61 }
 0xc54   :  { %2685 = vst [vmem:[#allocation11 + $0x70] sm:$0xff] %v2669_v21 }
 0xc55   :  { %3790 = shalt.err (!%p3787_p5)
}
 0xc56   :  { %s3791_s17 = scalar_lea.hbm %s4973_s10, 2048 }
 0xc57   :  { %p3792_p6 = scmp.ne.s32.totalorder %s4973_s10, %s3791_s17  ;;  %p3795_p7 = scmp.lt.u32.totalorder %s3791_s17, %s4973_s10 }
 0xc59   :  { %p3797_p8 = pnand %p3795_p7, %p3792_p6 }
 0xc5b   :  { %3800 = shalt.err (!%p3797_p8)
}
 0xc5c   :  { %2698 = dma.vmem_to_hbm [thread:$0]  %s2693_s23, 2048, %s4973_s10, [#allocation5], %s3817_s11, %s3817_s11, %s3818_s12  }
 0xc5d   :  { %3809 = dma.done.wait [#allocation5], 2048  }
 0xc5e   :  { %3810 = vsyncadd [#allocation5], 4294965248 }
 0xc5f   :  { %2702 = vsyncpa [#allocation4], 1 }
 0xc60   :  { %2703 = vsyncpa [#allocation8], 1 }
 0xc61   :  { %2704 = vsyncpa [#allocation5], 1 }
 0xc62   :  { %2705 = vsyncpa [#allocation6], 1 }

</bundles_post_ra>
